<compile_context>
chip_gen: v6e
topology: v6e:2x2x1
jax: 0.10.0
libtpu: 0.0.40
codegen_flags: <defaults>
</compile_context>

<pallas_src>
import jax
import jax.numpy as jnp
from jax.experimental import pallas as pl
from jax.experimental.pallas import tpu as pltpu


# ----------------------------------------------------------------------------
# Pallas kernel: depthwise 3x3 "same" conv for one batch element
# ----------------------------------------------------------------------------
def dwconv3x3_kernel(x_ref, w_ref, b_ref, o_ref, pad_ref):
    # x_ref  : (1, H, W, C)   channels-last activation tile
    # w_ref  : (9, C)         taps (kh*3+kw) x channels, lane-dense
    # b_ref  : (1, C)         bias
    # o_ref  : (1, H, W, C)
    # pad_ref: (H+2, W+2, C)  VMEM scratch with zero border
    H = x_ref.shape[1]
    W = x_ref.shape[2]
    C = x_ref.shape[3]

    # Zero only the 1-wide border; the interior is fully overwritten below.
    zrow = jnp.zeros((1, W + 2, C), jnp.float32)
    pad_ref[0:1, :, :] = zrow
    pad_ref[H + 1:H + 2, :, :] = zrow
    zcol = jnp.zeros((H, 1, C), jnp.float32)
    pad_ref[1:1 + H, 0:1, :] = zcol
    pad_ref[1:1 + H, W + 1:W + 2, :] = zcol

    # Write the activation into the interior of the padded scratch.
    pad_ref[1:1 + H, 1:1 + W, :] = x_ref[0].astype(jnp.float32)

    # Accumulate the 9 taps with 3 partial accumulators (one per kernel row).
    bias = jnp.broadcast_to(b_ref[0], (H, W, C))
    partial = []
    for kh in range(3):
        acc = bias if kh == 0 else jnp.zeros((H, W, C), jnp.float32)
        for kw in range(3):
            win = pad_ref[kh:kh + H, kw:kw + W, :]     # (H, W, C) window
            acc = acc + w_ref[kh * 3 + kw] * win       # (C,) broadcasts on lanes
        partial.append(acc)

    out = (partial[0] + partial[1]) + partial[2]
    o_ref[0] = out.astype(o_ref.dtype)


# ----------------------------------------------------------------------------
# Wrapper (NCHW in / NCHW out, like the PyTorch module)
# ----------------------------------------------------------------------------
def dwconv_pallas(x, weight, bias):
    # x: (B, C, H, W), weight: (C, 1, 3, 3), bias: (C,)
    B, C, H, W = x.shape

    # Layout plumbing on the host: channels-last activations, dense tap packing.
    x_nhwc = jnp.transpose(x, (0, 2, 3, 1))                          # (B, H, W, C)
    w_taps = jnp.transpose(weight[:, 0], (1, 2, 0)).reshape(9, C)    # (kh*3+kw, C)
    b_row = bias.reshape(1, C)

    out_nhwc = pl.pallas_call(
        dwconv3x3_kernel,
        out_shape=jax.ShapeDtypeStruct((B, H, W, C), x.dtype),
        grid=(B,),
        in_specs=[
            pl.BlockSpec((1, H, W, C), lambda i: (i, 0, 0, 0)),
            pl.BlockSpec((9, C), lambda i: (0, 0)),
            pl.BlockSpec((1, C), lambda i: (0, 0)),
        ],
        out_specs=pl.BlockSpec((1, H, W, C), lambda i: (i, 0, 0, 0)),
        scratch_shapes=[pltpu.VMEM((H + 2, W + 2, C), jnp.float32)],
        compiler_params=pltpu.CompilerParams(
            dimension_semantics=("parallel",),
            vmem_limit_bytes=48 * 1024 * 1024),
    )(x_nhwc, w_taps, b_row)

    return jnp.transpose(out_nhwc, (0, 3, 1, 2))                     # back to NCHW


# ----------------------------------------------------------------------------
# Pure-JAX reference (mirrors nn.Conv2d(dim, dim, 3, 1, 1, groups=dim))
# ----------------------------------------------------------------------------
def ref_dwconv(x, weight, bias):
    y = jax.lax.conv_general_dilated(
        x, weight, window_strides=(1, 1), padding=((1, 1), (1, 1)),
        dimension_numbers=('NCHW', 'OIHW', 'NCHW'),
        feature_group_count=x.shape[1])
    return y + bias[None, :, None, None]


# ----------------------------------------------------------------------------
if __name__ == "__main__":
    B, C, H, W = 2, 4, 16, 16
    key = jax.random.PRNGKey(0)
    kx, kw, kb = jax.random.split(key, 3)
    x = jax.random.normal(kx, (B, C, H, W), jnp.float32)
    weight = 0.2 * jax.random.normal(kw, (C, 1, 3, 3), jnp.float32)
    bias = 0.1 * jax.random.normal(kb, (C,), jnp.float32)

    y = dwconv_pallas(x, weight, bias)
    y = jax.block_until_ready(y)

    y_ref = ref_dwconv(x, weight, bias)
    assert y.shape == (B, C, H, W)
    max_err = float(jnp.max(jnp.abs(y - y_ref)))
    assert jnp.allclose(y, y_ref, atol=1e-5, rtol=1e-5), max_err
    print("KERNEL_OK")
</pallas_src>

<mosaic_0001>
module attributes {stable_mosaic.version = 11 : i64} {
  func.func @dwconv3x3_kernel(%arg0: i32, %arg1: memref<1x16x16x4xf32, #tpu.memory_space<vmem>>, %arg2: memref<9x4xf32, #tpu.memory_space<vmem>>, %arg3: memref<1x4xf32, #tpu.memory_space<vmem>>, %arg4: memref<1x16x16x4xf32, #tpu.memory_space<vmem>>, %arg5: memref<18x18x4xf32, #tpu.memory_space<vmem>>) attributes {dimension_semantics = [#tpu.dimension_semantics<parallel>], iteration_bounds = array<i64: 2>, scalar_prefetch = 0 : i64, scratch_operands = 1 : i64, tpu.core_type = #tpu.core_type<tc>, window_params = [{transform_indices = @transform_0, window_bounds = array<i64: 1, 16, 16, 4>}, {pipeline_mode = #tpu.pipeline_mode<synchronous>, transform_indices = @transform_1, window_bounds = array<i64: 9, 4>}, {pipeline_mode = #tpu.pipeline_mode<synchronous>, transform_indices = @transform_2, window_bounds = array<i64: 1, 4>}, {transform_indices = @transform_3, window_bounds = array<i64: 1, 16, 16, 4>}]} {
    %cst = arith.constant 0.000000e+00 : f32
    %0 = vector.broadcast %cst : f32 to vector<1x18x4xf32>
    %c0 = arith.constant 0 : index
    %c0_0 = arith.constant 0 : index
    %c0_1 = arith.constant 0 : index
    %1 = vector.load %arg5[%c0, %c0_0, %c0_1] : memref<18x18x4xf32, #tpu.memory_space<vmem>>, vector<1x18x4xf32>
    tpu.vector_store %arg5[%c0, %c0_0, %c0_1], %0 {strides = array<i32>} : memref<18x18x4xf32, #tpu.memory_space<vmem>>, vector<1x18x4xf32>,
    %c17 = arith.constant 17 : index
    %c0_2 = arith.constant 0 : index
    %c0_3 = arith.constant 0 : index
    %2 = vector.load %arg5[%c17, %c0_2, %c0_3] : memref<18x18x4xf32, #tpu.memory_space<vmem>>, vector<1x18x4xf32>
    tpu.vector_store %arg5[%c17, %c0_2, %c0_3], %0 {strides = array<i32>} : memref<18x18x4xf32, #tpu.memory_space<vmem>>, vector<1x18x4xf32>,
    %cst_4 = arith.constant 0.000000e+00 : f32
    %3 = vector.broadcast %cst_4 : f32 to vector<16x1x4xf32>
    %c1 = arith.constant 1 : index
    %c0_5 = arith.constant 0 : index
    %c0_6 = arith.constant 0 : index
    %4 = vector.load %arg5[%c1, %c0_5, %c0_6] : memref<18x18x4xf32, #tpu.memory_space<vmem>>, vector<16x1x4xf32>
    tpu.vector_store %arg5[%c1, %c0_5, %c0_6], %3 {strides = array<i32>} : memref<18x18x4xf32, #tpu.memory_space<vmem>>, vector<16x1x4xf32>,
    %c1_7 = arith.constant 1 : index
    %c17_8 = arith.constant 17 : index
    %c0_9 = arith.constant 0 : index
    %5 = vector.load %arg5[%c1_7, %c17_8, %c0_9] : memref<18x18x4xf32, #tpu.memory_space<vmem>>, vector<16x1x4xf32>
    tpu.vector_store %arg5[%c1_7, %c17_8, %c0_9], %3 {strides = array<i32>} : memref<18x18x4xf32, #tpu.memory_space<vmem>>, vector<16x1x4xf32>,
    %c0_10 = arith.constant 0 : index
    %c0_11 = arith.constant 0 : index
    %c0_12 = arith.constant 0 : index
    %c0_13 = arith.constant 0 : index
    %6 = vector.load %arg1[%c0_10, %c0_11, %c0_12, %c0_13] : memref<1x16x16x4xf32, #tpu.memory_space<vmem>>, vector<1x16x16x4xf32>
    %7 = vector.shape_cast %6 : vector<1x16x16x4xf32> to vector<16x16x4xf32>
    %c1_14 = arith.constant 1 : index
    %c1_15 = arith.constant 1 : index
    %c0_16 = arith.constant 0 : index
    %8 = vector.load %arg5[%c1_14, %c1_15, %c0_16] : memref<18x18x4xf32, #tpu.memory_space<vmem>>, vector<16x16x4xf32>
    tpu.vector_store %arg5[%c1_14, %c1_15, %c0_16], %7 {strides = array<i32>} : memref<18x18x4xf32, #tpu.memory_space<vmem>>, vector<16x16x4xf32>,
    %c0_17 = arith.constant 0 : index
    %c0_18 = arith.constant 0 : index
    %9 = vector.load %arg3[%c0_17, %c0_18] : memref<1x4xf32, #tpu.memory_space<vmem>>, vector<1x4xf32>
    %10 = vector.shape_cast %9 : vector<1x4xf32> to vector<4xf32>
    %11 = vector.shape_cast %10 : vector<4xf32> to vector<1x1x4xf32>
    %12 = vector.broadcast %11 : vector<1x1x4xf32> to vector<16x16x4xf32>
    %c0_19 = arith.constant 0 : index
    %c0_20 = arith.constant 0 : index
    %c0_21 = arith.constant 0 : index
    %13 = vector.load %arg5[%c0_19, %c0_20, %c0_21] : memref<18x18x4xf32, #tpu.memory_space<vmem>>, vector<16x16x4xf32>
    %c0_22 = arith.constant 0 : index
    %c0_23 = arith.constant 0 : index
    %14 = vector.load %arg2[%c0_22, %c0_23] : memref<9x4xf32, #tpu.memory_space<vmem>>, vector<1x4xf32>
    %15 = vector.shape_cast %14 : vector<1x4xf32> to vector<4xf32>
    %16 = vector.shape_cast %15 : vector<4xf32> to vector<1x1x4xf32>
    %17 = vector.broadcast %16 : vector<1x1x4xf32> to vector<16x16x4xf32>
    %18 = arith.mulf %17, %13 : vector<16x16x4xf32>
    %19 = arith.addf %12, %18 : vector<16x16x4xf32>
    %c0_24 = arith.constant 0 : index
    %c1_25 = arith.constant 1 : index
    %c0_26 = arith.constant 0 : index
    %20 = vector.load %arg5[%c0_24, %c1_25, %c0_26] : memref<18x18x4xf32, #tpu.memory_space<vmem>>, vector<16x16x4xf32>
    %c1_27 = arith.constant 1 : index
    %c0_28 = arith.constant 0 : index
    %21 = vector.load %arg2[%c1_27, %c0_28] : memref<9x4xf32, #tpu.memory_space<vmem>>, vector<1x4xf32>
    %22 = vector.shape_cast %21 : vector<1x4xf32> to vector<4xf32>
    %23 = vector.shape_cast %22 : vector<4xf32> to vector<1x1x4xf32>
    %24 = vector.broadcast %23 : vector<1x1x4xf32> to vector<16x16x4xf32>
    %25 = arith.mulf %24, %20 : vector<16x16x4xf32>
    %26 = arith.addf %19, %25 : vector<16x16x4xf32>
    %c0_29 = arith.constant 0 : index
    %c2 = arith.constant 2 : index
    %c0_30 = arith.constant 0 : index
    %27 = vector.load %arg5[%c0_29, %c2, %c0_30] : memref<18x18x4xf32, #tpu.memory_space<vmem>>, vector<16x16x4xf32>
    %c2_31 = arith.constant 2 : index
    %c0_32 = arith.constant 0 : index
    %28 = vector.load %arg2[%c2_31, %c0_32] : memref<9x4xf32, #tpu.memory_space<vmem>>, vector<1x4xf32>
    %29 = vector.shape_cast %28 : vector<1x4xf32> to vector<4xf32>
    %30 = vector.shape_cast %29 : vector<4xf32> to vector<1x1x4xf32>
    %31 = vector.broadcast %30 : vector<1x1x4xf32> to vector<16x16x4xf32>
    %32 = arith.mulf %31, %27 : vector<16x16x4xf32>
    %33 = arith.addf %26, %32 : vector<16x16x4xf32>
    %cst_33 = arith.constant 0.000000e+00 : f32
    %34 = vector.broadcast %cst_33 : f32 to vector<16x16x4xf32>
    %c1_34 = arith.constant 1 : index
    %c0_35 = arith.constant 0 : index
    %c0_36 = arith.constant 0 : index
    %35 = vector.load %arg5[%c1_34, %c0_35, %c0_36] : memref<18x18x4xf32, #tpu.memory_space<vmem>>, vector<16x16x4xf32>
    %c3 = arith.constant 3 : index
    %c0_37 = arith.constant 0 : index
    %36 = vector.load %arg2[%c3, %c0_37] : memref<9x4xf32, #tpu.memory_space<vmem>>, vector<1x4xf32>
    %37 = vector.shape_cast %36 : vector<1x4xf32> to vector<4xf32>
    %38 = vector.shape_cast %37 : vector<4xf32> to vector<1x1x4xf32>
    %39 = vector.broadcast %38 : vector<1x1x4xf32> to vector<16x16x4xf32>
    %40 = arith.mulf %39, %35 : vector<16x16x4xf32>
    %41 = arith.addf %34, %40 : vector<16x16x4xf32>
    %c1_38 = arith.constant 1 : index
    %c1_39 = arith.constant 1 : index
    %c0_40 = arith.constant 0 : index
    %42 = vector.load %arg5[%c1_38, %c1_39, %c0_40] : memref<18x18x4xf32, #tpu.memory_space<vmem>>, vector<16x16x4xf32>
    %c4 = arith.constant 4 : index
    %c0_41 = arith.constant 0 : index
    %43 = vector.load %arg2[%c4, %c0_41] : memref<9x4xf32, #tpu.memory_space<vmem>>, vector<1x4xf32>
    %44 = vector.shape_cast %43 : vector<1x4xf32> to vector<4xf32>
    %45 = vector.shape_cast %44 : vector<4xf32> to vector<1x1x4xf32>
    %46 = vector.broadcast %45 : vector<1x1x4xf32> to vector<16x16x4xf32>
    %47 = arith.mulf %46, %42 : vector<16x16x4xf32>
    %48 = arith.addf %41, %47 : vector<16x16x4xf32>
    %c1_42 = arith.constant 1 : index
    %c2_43 = arith.constant 2 : index
    %c0_44 = arith.constant 0 : index
    %49 = vector.load %arg5[%c1_42, %c2_43, %c0_44] : memref<18x18x4xf32, #tpu.memory_space<vmem>>, vector<16x16x4xf32>
    %c5 = arith.constant 5 : index
    %c0_45 = arith.constant 0 : index
    %50 = vector.load %arg2[%c5, %c0_45] : memref<9x4xf32, #tpu.memory_space<vmem>>, vector<1x4xf32>
    %51 = vector.shape_cast %50 : vector<1x4xf32> to vector<4xf32>
    %52 = vector.shape_cast %51 : vector<4xf32> to vector<1x1x4xf32>
    %53 = vector.broadcast %52 : vector<1x1x4xf32> to vector<16x16x4xf32>
    %54 = arith.mulf %53, %49 : vector<16x16x4xf32>
    %55 = arith.addf %48, %54 : vector<16x16x4xf32>
    %cst_46 = arith.constant 0.000000e+00 : f32
    %56 = vector.broadcast %cst_46 : f32 to vector<16x16x4xf32>
    %c2_47 = arith.constant 2 : index
    %c0_48 = arith.constant 0 : index
    %c0_49 = arith.constant 0 : index
    %57 = vector.load %arg5[%c2_47, %c0_48, %c0_49] : memref<18x18x4xf32, #tpu.memory_space<vmem>>, vector<16x16x4xf32>
    %c6 = arith.constant 6 : index
    %c0_50 = arith.constant 0 : index
    %58 = vector.load %arg2[%c6, %c0_50] : memref<9x4xf32, #tpu.memory_space<vmem>>, vector<1x4xf32>
    %59 = vector.shape_cast %58 : vector<1x4xf32> to vector<4xf32>
    %60 = vector.shape_cast %59 : vector<4xf32> to vector<1x1x4xf32>
    %61 = vector.broadcast %60 : vector<1x1x4xf32> to vector<16x16x4xf32>
    %62 = arith.mulf %61, %57 : vector<16x16x4xf32>
    %63 = arith.addf %56, %62 : vector<16x16x4xf32>
    %c2_51 = arith.constant 2 : index
    %c1_52 = arith.constant 1 : index
    %c0_53 = arith.constant 0 : index
    %64 = vector.load %arg5[%c2_51, %c1_52, %c0_53] : memref<18x18x4xf32, #tpu.memory_space<vmem>>, vector<16x16x4xf32>
    %c7 = arith.constant 7 : index
    %c0_54 = arith.constant 0 : index
    %65 = vector.load %arg2[%c7, %c0_54] : memref<9x4xf32, #tpu.memory_space<vmem>>, vector<1x4xf32>
    %66 = vector.shape_cast %65 : vector<1x4xf32> to vector<4xf32>
    %67 = vector.shape_cast %66 : vector<4xf32> to vector<1x1x4xf32>
    %68 = vector.broadcast %67 : vector<1x1x4xf32> to vector<16x16x4xf32>
    %69 = arith.mulf %68, %64 : vector<16x16x4xf32>
    %70 = arith.addf %63, %69 : vector<16x16x4xf32>
    %c2_55 = arith.constant 2 : index
    %c2_56 = arith.constant 2 : index
    %c0_57 = arith.constant 0 : index
    %71 = vector.load %arg5[%c2_55, %c2_56, %c0_57] : memref<18x18x4xf32, #tpu.memory_space<vmem>>, vector<16x16x4xf32>
    %c8 = arith.constant 8 : index
    %c0_58 = arith.constant 0 : index
    %72 = vector.load %arg2[%c8, %c0_58] : memref<9x4xf32, #tpu.memory_space<vmem>>, vector<1x4xf32>
    %73 = vector.shape_cast %72 : vector<1x4xf32> to vector<4xf32>
    %74 = vector.shape_cast %73 : vector<4xf32> to vector<1x1x4xf32>
    %75 = vector.broadcast %74 : vector<1x1x4xf32> to vector<16x16x4xf32>
    %76 = arith.mulf %75, %71 : vector<16x16x4xf32>
    %77 = arith.addf %70, %76 : vector<16x16x4xf32>
    %78 = arith.addf %33, %55 : vector<16x16x4xf32>
    %79 = arith.addf %78, %77 : vector<16x16x4xf32>
    %c0_59 = arith.constant 0 : index
    %c0_60 = arith.constant 0 : index
    %c0_61 = arith.constant 0 : index
    %c0_62 = arith.constant 0 : index
    %80 = vector.load %arg4[%c0_59, %c0_60, %c0_61, %c0_62] : memref<1x16x16x4xf32, #tpu.memory_space<vmem>>, vector<1x16x16x4xf32>
    %81 = vector.shape_cast %80 : vector<1x16x16x4xf32> to vector<16x16x4xf32>
    %82 = vector.shape_cast %79 : vector<16x16x4xf32> to vector<1x16x16x4xf32>
    tpu.vector_store %arg4[%c0_59, %c0_60, %c0_61, %c0_62], %82 {strides = array<i32>} : memref<1x16x16x4xf32, #tpu.memory_space<vmem>>, vector<1x16x16x4xf32>,
    return
  }
  func.func @transform_0(%arg0: i32) -> (i32, i32, i32, i32) {
    %c0_i32 = arith.constant 0 : i32
    %c0_i32_0 = arith.constant 0 : i32
    %c0_i32_1 = arith.constant 0 : i32
    %c0_i32_2 = arith.constant 0 : i32
    return %arg0, %c0_i32, %c0_i32_0, %c0_i32_1 : i32, i32, i32, i32
  }
  func.func @transform_1(%arg0: i32) -> (i32, i32) {
    %c0_i32 = arith.constant 0 : i32
    %c0_i32_0 = arith.constant 0 : i32
    %c0_i32_1 = arith.constant 0 : i32
    return %c0_i32, %c0_i32_0 : i32, i32
  }
  func.func @transform_2(%arg0: i32) -> (i32, i32) {
    %c0_i32 = arith.constant 0 : i32
    %c0_i32_0 = arith.constant 0 : i32
    %c0_i32_1 = arith.constant 0 : i32
    return %c0_i32, %c0_i32_0 : i32, i32
  }
  func.func @transform_3(%arg0: i32) -> (i32, i32, i32, i32) {
    %c0_i32 = arith.constant 0 : i32
    %c0_i32_0 = arith.constant 0 : i32
    %c0_i32_1 = arith.constant 0 : i32
    %c0_i32_2 = arith.constant 0 : i32
    return %arg0, %c0_i32, %c0_i32_0, %c0_i32_1 : i32, i32, i32, i32
  }
}

</mosaic_0001>

<bundles_post_ra>
// kernel: tpu_custom_call.1
= control target key start
LH: loop header
LB: loop body
LE: loop exit
PB: predicated region body
PF: predicated region fallthrough
CT: control target
= control target key end

     0   :  { %s1417_s12 = smov 0   ;;  %s2459_s0 = inlined_call_operand.vmem [shape: f32[2,16,16,4], index: 0, kind: input, shape index: {}]   ;;  %s2460_s1 = inlined_call_operand.vmem [shape: f32[9,4], index: 1, kind: input, shape index: {}]   ;;  %s2461_s2 = inlined_call_operand.vmem [shape: f32[1,4], index: 2, kind: input, shape index: {}]   ;;  %s2462_s3 = inlined_call_operand.vmem [shape: f32[2,16,16,4], index: 3, kind: output, shape index: {}]  }
   0x1 LB: > { %s1346_s13 = sadd.s32 4294967295, %s1394_s12   ;;  %p1350_p0 = scmp.ge.s32.totalorder %s1394_s12, 1  ;;  %s1394_s12 = sphi %s1417_s12, %s13_s12  }
   0x2   : > { %p137_p1 = scmp.lt.s32.totalorder %s1394_s12, 3 }
   0x4   : > { %p138_p2 = pnand %p1350_p0, %p137_p1 }
   0x5   : > { %p1427_p3 = scmp.lt.s32.totalorder (!%p138_p2), %s1346_s13, 1 }
   0x6   : > { %141 = sbr.rel (%p138_p2) target bundleno = 190 (0xbe), region = 32 }
   0xb   : > { %vm171_vm0 = vcmask 31744   ;;  %vm174_vm1 = vcmask 25600   ;;  %vm181_vm2 = vcmask 24576   ;;  %v1396_v0 = vmov 0.0   ;;  %s2465_s13 = smov (!%p1427_p3, %s1346_s13), 1 }
   0xc   : > { %172 = vst.msk [vmem:[#allocation2] sm:$0xff] %vm171_vm0, %v1396_v0  ;;  %173 = vst.msk [vmem:[#allocation2 + $0x8] sm:$0xff] %vm171_vm0, %v1396_v0  ;;  %s1367_s15 = sshll.u32 %s2465_s13, 8  ;;  %v1523_v22 = vld [vmem:[%s2460_s1] ss:$0 sm:$0xff] }
   0xd   : > { %177 = vst.msk [vmem:[#allocation2 + $0x198] sm:$0xff] %vm171_vm0, %v1396_v0  ;;  %178 = vst.msk [vmem:[#allocation2 + $0x1a0] sm:$0xff] %vm171_vm0, %v1396_v0  ;;  %s1479_s18 = scalar_lea.vmem %s2459_s0, %s1367_s15  ;;  %v1534_v26 = vld [vmem:[%s2460_s1 + $0x1] ss:$0 sm:$0xff]  ;;  %v1539_v27 = vld [vmem:[%s2460_s1 + $0x2] ss:$0 sm:$0xff]  ;;  %s1646_s17 = scalar_lea.vmem %s2462_s3, %s1367_s15 }
   0xe   : > { %175 = vst.msk [vmem:[#allocation2 + $0x10] sm:$0x3] %vm174_vm1, %v1396_v0  ;;  %179 = vst.msk [vmem:[#allocation2 + $0x1a8] sm:$0x3] %vm174_vm1, %v1396_v0  ;;  %v214_v1 = vld [vmem:[%s1479_s18] sm:$0xff]  ;;  %v215_v2 = vld [vmem:[%s1479_s18 + $0x8] sm:$0xff] }
   0xf   : > { %182 = vst.msk [vmem:[#allocation2 + $0x18] sm:$0x1] %vm181_vm2, %v1396_v0  ;;  %183 = vst.msk [vmem:[#allocation2 + $0x30] sm:$0x1] %vm181_vm2, %v1396_v0  ;;  %v216_v3 = vld [vmem:[%s1479_s18 + $0x10] sm:$0xff]  ;;  %v217_v4 = vld [vmem:[%s1479_s18 + $0x18] sm:$0xff] }
  0x10   : > { %184 = vst.msk [vmem:[#allocation2 + $0x48] sm:$0x1] %vm181_vm2, %v1396_v0  ;;  %185 = vst.msk [vmem:[#allocation2 + $0x60] sm:$0x1] %vm181_vm2, %v1396_v0  ;;  %v218_v5 = vld [vmem:[%s1479_s18 + $0x20] sm:$0xff]  ;;  %v219_v6 = vld [vmem:[%s1479_s18 + $0x28] sm:$0xff] }
  0x11   : > { %186 = vst.msk [vmem:[#allocation2 + $0x78] sm:$0x1] %vm181_vm2, %v1396_v0  ;;  %187 = vst.msk [vmem:[#allocation2 + $0x90] sm:$0x1] %vm181_vm2, %v1396_v0  ;;  %v220_v7 = vld [vmem:[%s1479_s18 + $0x30] sm:$0xff]  ;;  %v221_v8 = vld [vmem:[%s1479_s18 + $0x38] sm:$0xff] }
  0x12   : > { %188 = vst.msk [vmem:[#allocation2 + $0xa8] sm:$0x1] %vm181_vm2, %v1396_v0  ;;  %189 = vst.msk [vmem:[#allocation2 + $0xc0] sm:$0x1] %vm181_vm2, %v1396_v0  ;;  %v222_v9 = vld [vmem:[%s1479_s18 + $0x40] sm:$0xff]  ;;  %v223_v10 = vld [vmem:[%s1479_s18 + $0x48] sm:$0xff] }
  0x13   : > { %190 = vst.msk [vmem:[#allocation2 + $0xd8] sm:$0x1] %vm181_vm2, %v1396_v0  ;;  %191 = vst.msk [vmem:[#allocation2 + $0xf0] sm:$0x1] %vm181_vm2, %v1396_v0  ;;  %v224_v11 = vld [vmem:[%s1479_s18 + $0x50] sm:$0xff]  ;;  %v225_v12 = vld [vmem:[%s1479_s18 + $0x58] sm:$0xff] }
  0x14   : > { %192 = vst.msk [vmem:[#allocation2 + $0x108] sm:$0x1] %vm181_vm2, %v1396_v0  ;;  %193 = vst.msk [vmem:[#allocation2 + $0x120] sm:$0x1] %vm181_vm2, %v1396_v0  ;;  %v226_v13 = vld [vmem:[%s1479_s18 + $0x60] sm:$0xff]  ;;  %v227_v14 = vld [vmem:[%s1479_s18 + $0x68] sm:$0xff] }
  0x15   : > { %194 = vst.msk [vmem:[#allocation2 + $0x138] sm:$0x1] %vm181_vm2, %v1396_v0  ;;  %195 = vst.msk [vmem:[#allocation2 + $0x150] sm:$0x1] %vm181_vm2, %v1396_v0  ;;  %v228_v15 = vld [vmem:[%s1479_s18 + $0x70] sm:$0xff]  ;;  %v229_v16 = vld [vmem:[%s1479_s18 + $0x78] sm:$0xff] }
  0x16   : > { %196 = vst.msk [vmem:[#allocation2 + $0x168] sm:$0x1] %vm181_vm2, %v1396_v0  ;;  %197 = vst.msk [vmem:[#allocation2 + $0x180] sm:$0x1] %vm181_vm2, %v1396_v0  ;;  %v230_v17 = vld [vmem:[%s1479_s18 + $0x80] sm:$0xff]  ;;  %v231_v18 = vld [vmem:[%s1479_s18 + $0x88] sm:$0xff] }
  0x17   : > { %198 = vst.msk [vmem:[#allocation2 + $0x29] sm:$0x1] %vm181_vm2, %v1396_v0  ;;  %199 = vst.msk [vmem:[#allocation2 + $0x41] sm:$0x1] %vm181_vm2, %v1396_v0  ;;  %v232_v19 = vld [vmem:[%s1479_s18 + $0x90] sm:$0xff]  ;;  %v233_v20 = vld [vmem:[%s1479_s18 + $0x98] sm:$0xff] }
  0x18   : > { %200 = vst.msk [vmem:[#allocation2 + $0x59] sm:$0x1] %vm181_vm2, %v1396_v0  ;;  %201 = vst.msk [vmem:[#allocation2 + $0x71] sm:$0x1] %vm181_vm2, %v1396_v0  ;;  %v234_v21 = vld [vmem:[%s1479_s18 + $0xa0] sm:$0xff]  ;;  %v235_v23 = vld [vmem:[%s1479_s18 + $0xa8] sm:$0xff] }
  0x19   : > { %202 = vst.msk [vmem:[#allocation2 + $0x89] sm:$0x1] %vm181_vm2, %v1396_v0  ;;  %203 = vst.msk [vmem:[#allocation2 + $0xa1] sm:$0x1] %vm181_vm2, %v1396_v0  ;;  %v236_v24 = vld [vmem:[%s1479_s18 + $0xb0] sm:$0xff]  ;;  %v237_v25 = vld [vmem:[%s1479_s18 + $0xb8] sm:$0xff] }
  0x1a   : > { %204 = vst.msk [vmem:[#allocation2 + $0xb9] sm:$0x1] %vm181_vm2, %v1396_v0  ;;  %205 = vst.msk [vmem:[#allocation2 + $0xd1] sm:$0x1] %vm181_vm2, %v1396_v0  ;;  %v1544_v28 = vld [vmem:[%s2460_s1 + $0x3] ss:$0 sm:$0xff] }
  0x1b   : > { %206 = vst.msk [vmem:[#allocation2 + $0xe9] sm:$0x1] %vm181_vm2, %v1396_v0  ;;  %207 = vst.msk [vmem:[#allocation2 + $0x101] sm:$0x1] %vm181_vm2, %v1396_v0  ;;  %v238_v29 = vld [vmem:[%s1479_s18 + $0xc0] sm:$0xff]  ;;  %v239_v30 = vld [vmem:[%s1479_s18 + $0xc8] sm:$0xff] }
  0x1c   : > { %208 = vst.msk [vmem:[#allocation2 + $0x119] sm:$0x1] %vm181_vm2, %v1396_v0  ;;  %209 = vst.msk [vmem:[#allocation2 + $0x131] sm:$0x1] %vm181_vm2, %v1396_v0  ;;  %v240_v31 = vld [vmem:[%s1479_s18 + $0xd0] sm:$0xff]  ;;  %v241_v36 = vld [vmem:[%s1479_s18 + $0xd8] sm:$0xff] }
  0x1d   : > { %210 = vst.msk [vmem:[#allocation2 + $0x149] sm:$0x1] %vm181_vm2, %v1396_v0  ;;  %211 = vst.msk [vmem:[#allocation2 + $0x161] sm:$0x1] %vm181_vm2, %v1396_v0  ;;  %v1555_v32 = vld [vmem:[%s2461_s2] ss:$0 sm:$0xff] }
  0x1e   : > { %212 = vst.msk [vmem:[#allocation2 + $0x179] sm:$0x1] %vm181_vm2, %v1396_v0  ;;  %213 = vst.msk [vmem:[#allocation2 + $0x191] sm:$0x1] %vm181_vm2, %v1396_v0  ;;  %v1560_v33 = vld [vmem:[%s2460_s1 + $0x4] ss:$0 sm:$0xff] }
  0x1f   : > { %246 = vst.msk [vmem:[#allocation2 + $0x19] sm:$0xff] %vm171_vm0, %v214_v1  ;;  %247 = vst.msk [vmem:[#allocation2 + $0x21] sm:$0xff] %vm171_vm0, %v215_v2  ;;  %v1565_v34 = vld [vmem:[%s2460_s1 + $0x5] ss:$0 sm:$0xff]  ;;  %v1570_v35 = vld [vmem:[%s2460_s1 + $0x6] ss:$0 sm:$0xff] }
  0x20   : > { %248 = vst.msk [vmem:[#allocation2 + $0x31] sm:$0xff] %vm171_vm0, %v216_v3  ;;  %249 = vst.msk [vmem:[#allocation2 + $0x39] sm:$0xff] %vm171_vm0, %v217_v4  ;;  %v242_v37 = vld [vmem:[%s1479_s18 + $0xe0] sm:$0xff]  ;;  %v243_v38 = vld [vmem:[%s1479_s18 + $0xe8] sm:$0xff] }
  0x21   : > { %250 = vst.msk [vmem:[#allocation2 + $0x49] sm:$0xff] %vm171_vm0, %v218_v5  ;;  %251 = vst.msk [vmem:[#allocation2 + $0x51] sm:$0xff] %vm171_vm0, %v219_v6  ;;  %v1581_v39 = vld [vmem:[%s2460_s1 + $0x7] ss:$0 sm:$0xff]  ;;  %v1586_v40 = vld [vmem:[%s2460_s1 + $0x8] ss:$0 sm:$0xff] }
  0x22   : > { %252 = vst.msk [vmem:[#allocation2 + $0x61] sm:$0xff] %vm171_vm0, %v220_v7  ;;  %253 = vst.msk [vmem:[#allocation2 + $0x69] sm:$0xff] %vm171_vm0, %v221_v8  ;;  %v244_v41 = vld [vmem:[%s1479_s18 + $0xf0] sm:$0xff]  ;;  %v245_v42 = vld [vmem:[%s1479_s18 + $0xf8] sm:$0xff] }
  0x23   : > { %254 = vst.msk [vmem:[#allocation2 + $0x79] sm:$0xff] %vm171_vm0, %v222_v9  ;;  %255 = vst.msk [vmem:[#allocation2 + $0x81] sm:$0xff] %vm171_vm0, %v223_v10  ;;  %v285_v43 = vld [vmem:[#allocation2] sm:$0xff]  ;;  %v286_v61 = vld [vmem:[#allocation2 + $0x8] sm:$0xff] }
  0x24   : > { %256 = vst.msk [vmem:[#allocation2 + $0x91] sm:$0xff] %vm171_vm0, %v224_v11  ;;  %257 = vst.msk [vmem:[#allocation2 + $0x99] sm:$0xff] %vm171_vm0, %v225_v12  ;;  %v322_v44 = vmul.f32 %v1523_v22, %v285_v43  ;;  %v386_v45 = vld [vmem:[#allocation2 + $0x1] sm:$0xff]  ;;  %v323_v0 = vmul.f32 %v1523_v22, %v286_v61  ;;  %v387_v1 = vld [vmem:[#allocation2 + $0x9] sm:$0xff] }
  0x25   : > { %258 = vst.msk [vmem:[#allocation2 + $0xa9] sm:$0xff] %vm171_vm0, %v226_v13  ;;  %259 = vst.msk [vmem:[#allocation2 + $0xb1] sm:$0xff] %vm171_vm0, %v227_v14  ;;  %v487_v46 = vld [vmem:[#allocation2 + $0x2] sm:$0xff]  ;;  %v423_v48 = vmul.f32 %v1534_v26, %v386_v45  ;;  %v488_v2 = vld [vmem:[#allocation2 + $0xa] sm:$0xff]  ;;  %v424_v7 = vmul.f32 %v1534_v26, %v387_v1 }
  0x26   : > { %260 = vst.msk [vmem:[#allocation2 + $0xc1] sm:$0xff] %vm171_vm0, %v228_v15  ;;  %261 = vst.msk [vmem:[#allocation2 + $0xc9] sm:$0xff] %vm171_vm0, %v229_v16  ;;  %v588_v47 = vld [vmem:[#allocation2 + $0x18] sm:$0xff]  ;;  %v524_v49 = vmul.f32 %v1539_v27, %v487_v46  ;;  %v354_v55 = vadd.f32 %v1555_v32, %v322_v44  ;;  %v589_v3 = vld [vmem:[#allocation2 + $0x20] sm:$0xff]  ;;  %v525_v8 = vmul.f32 %v1539_v27, %v488_v2 }
  0x27   : > { %262 = vst.msk [vmem:[#allocation2 + $0xd9] sm:$0xff] %vm171_vm0, %v230_v17  ;;  %263 = vst.msk [vmem:[#allocation2 + $0xe1] sm:$0xff] %vm171_vm0, %v231_v18  ;;  %v625_v50 = vmul.f32 %v1544_v28, %v588_v47  ;;  %v689_v51 = vld [vmem:[#allocation2 + $0x19] sm:$0xff]  ;;  %v1599_v53 = vld [vmem:[#allocation2 + $0x30] sm:$0xff]  ;;  %v324_v54 = vmul.f32 %v1523_v22, %v588_v47  ;;  %v355_v13 = vadd.f32 %v1555_v32, %v323_v0 }
  0x28   : > { %264 = vst.msk [vmem:[#allocation2 + $0xf1] sm:$0xff] %vm171_vm0, %v232_v19  ;;  %265 = vst.msk [vmem:[#allocation2 + $0xf9] sm:$0xff] %vm171_vm0, %v233_v20  ;;  %v790_v52 = vld [vmem:[#allocation2 + $0x1a] sm:$0xff]  ;;  %v726_v56 = vmul.f32 %v1560_v33, %v689_v51  ;;  %v929_v58 = vmul.f32 %v1570_v35, %v1599_v53  ;;  %v1607_v59 = vld [vmem:[#allocation2 + $0x31] sm:$0xff]  ;;  %v455_v5 = vadd.f32 %v423_v48, %v354_v55 }
  0x29   : > { %266 = vst.msk [vmem:[#allocation2 + $0x109] sm:$0xff] %vm171_vm0, %v234_v21  ;;  %267 = vst.msk [vmem:[#allocation2 + $0x111] sm:$0xff] %vm171_vm0, %v235_v23  ;;  %v827_v57 = vmul.f32 %v1565_v34, %v790_v52  ;;  %v1609_v60 = vld [vmem:[#allocation2 + $0x32] sm:$0xff]  ;;  %v1030_v62 = vmul.f32 %v1581_v39, %v1607_v59  ;;  %v356_v4 = vadd.f32 %v1555_v32, %v324_v54  ;;  %v690_v9 = vld [vmem:[#allocation2 + $0x21] sm:$0xff] }
  0x2a   : > { %268 = vst.msk [vmem:[#allocation2 + $0x121] sm:$0xff] %vm171_vm0, %v236_v24  ;;  %269 = vst.msk [vmem:[#allocation2 + $0x129] sm:$0xff] %vm171_vm0, %v237_v25  ;;  %v1131_v63 = vmul.f32 %v1586_v40, %v1609_v60  ;;  %v758_v6 = vadd.f32 %v726_v56, %v625_v50  ;;  %v791_v10 = vld [vmem:[#allocation2 + $0x22] sm:$0xff]  ;;  %v1619_v11 = vld [vmem:[#allocation2 + $0x38] sm:$0xff]  ;;  %v626_v14 = vmul.f32 %v1544_v28, %v589_v3 }
  0x2b   : > { %270 = vst.msk [vmem:[#allocation2 + $0x139] sm:$0xff] %vm171_vm0, %v238_v29  ;;  %271 = vst.msk [vmem:[#allocation2 + $0x141] sm:$0xff] %vm171_vm0, %v239_v30  ;;  %v1062_v12 = vadd.f32 %v1030_v62, %v929_v58  ;;  %v727_v15 = vmul.f32 %v1560_v33, %v690_v9  ;;  %v1624_v16 = vld [vmem:[#allocation2 + $0x39] sm:$0xff]  ;;  %v556_v18 = vadd.f32 %v524_v49, %v455_v5  ;;  %v1650_v46 = vld [vmem:[#allocation2 + $0x4a] sm:$0xff] }
  0x2c   : > { %272 = vst.msk [vmem:[#allocation2 + $0x151] sm:$0xff] %vm171_vm0, %v240_v31  ;;  %273 = vst.msk [vmem:[#allocation2 + $0x159] sm:$0xff] %vm171_vm0, %v241_v36  ;;  %v1626_v17 = vld [vmem:[#allocation2 + $0x3a] sm:$0xff]  ;;  %v859_v19 = vadd.f32 %v827_v57, %v758_v6  ;;  %v828_v20 = vmul.f32 %v1565_v34, %v791_v10  ;;  %v930_v21 = vmul.f32 %v1570_v35, %v1619_v11  ;;  %v1665_v62 = vld [vmem:[#allocation2 + $0x50] sm:$0xff] }
  0x2d   : > { %274 = vst.msk [vmem:[#allocation2 + $0x169] sm:$0xff] %vm171_vm0, %v242_v37  ;;  %275 = vst.msk [vmem:[#allocation2 + $0x171] sm:$0xff] %vm171_vm0, %v243_v38  ;;  %v1163_v23 = vadd.f32 %v1131_v63, %v1062_v12  ;;  %v456_v24 = vadd.f32 %v424_v7, %v355_v13  ;;  %v759_v25 = vadd.f32 %v727_v15, %v626_v14  ;;  %v1637_v38 = vld [vmem:[#allocation2 + $0x48] sm:$0xff]  ;;  %v1667_v63 = vld [vmem:[#allocation2 + $0x51] sm:$0xff] }
  0x2e   : > { %276 = vst.msk [vmem:[#allocation2 + $0x181] sm:$0xff] %vm171_vm0, %v244_v41  ;;  %277 = vst.msk [vmem:[#allocation2 + $0x189] sm:$0xff] %vm171_vm0, %v245_v42  ;;  %v1031_v29 = vmul.f32 %v1581_v39, %v1624_v16  ;;  %v1195_v30 = vadd.f32 %v859_v19, %v556_v18  ;;  %v1132_v31 = vmul.f32 %v1586_v40, %v1626_v17  ;;  %v1639_v41 = vld [vmem:[#allocation2 + $0x49] sm:$0xff]  ;;  %v1671_v5 = vld [vmem:[#allocation2 + $0x52] sm:$0xff] }
  0x2f   : > { %v425_v36 = vmul.f32 %v1534_v26, %v689_v51  ;;  %v526_v37 = vmul.f32 %v1539_v27, %v790_v52  ;;  %v557_v42 = vadd.f32 %v525_v8, %v456_v24  ;;  %v860_v43 = vadd.f32 %v828_v20, %v759_v25  ;;  %v1694_v25 = vld [vmem:[#allocation2 + $0x60] sm:$0xff] }
  0x30   : > { %v1063_v44 = vadd.f32 %v1031_v29, %v930_v21  ;;  %v627_v45 = vmul.f32 %v1544_v28, %v1599_v53  ;;  %v1227_v47 = vadd.f32 %v1195_v30, %v1163_v23  ;;  %v728_v49 = vmul.f32 %v1560_v33, %v1607_v59  ;;  %v1696_v29 = vld [vmem:[#allocation2 + $0x61] sm:$0xff] }
  0x31   : > { %v457_v48 = vadd.f32 %v425_v36, %v356_v4  ;;  %v829_v50 = vmul.f32 %v1565_v34, %v1609_v60  ;;  %v1196_v52 = vadd.f32 %v860_v43, %v557_v42  ;;  %v931_v54 = vmul.f32 %v1570_v35, %v1637_v38  ;;  %v1698_v30 = vld [vmem:[#allocation2 + $0x62] sm:$0xff] }
  0x32   : > { %v1164_v51 = vadd.f32 %v1132_v31, %v1063_v44  ;;  %v1032_v55 = vmul.f32 %v1581_v39, %v1639_v41  ;;  %1259 = vst.msk [vmem:[%s1646_s17] sm:$0xff] %vm171_vm0, %v1227_v47  ;;  %v760_v57 = vadd.f32 %v728_v49, %v627_v45  ;;  %v1133_v58 = vmul.f32 %v1586_v40, %v1650_v46 }
  0x33   : > { %v558_v56 = vadd.f32 %v526_v37, %v457_v48  ;;  %v325_v61 = vmul.f32 %v1523_v22, %v589_v3  ;;  %v426_v2 = vmul.f32 %v1534_v26, %v690_v9  ;;  %v527_v4 = vmul.f32 %v1539_v27, %v791_v10 }
  0x34   : > { %v1228_v0 = vadd.f32 %v1196_v52, %v1164_v51  ;;  %v1064_v1 = vadd.f32 %v1032_v55, %v931_v54  ;;  %v861_v6 = vadd.f32 %v829_v50, %v760_v57  ;;  %v628_v8 = vmul.f32 %v1544_v28, %v1619_v11  ;;  %v1719_v54 = vld [vmem:[#allocation2 + $0x68] sm:$0xff] }
  0x35   : > { %v357_v7 = vadd.f32 %v1555_v32, %v325_v61  ;;  %v729_v3 = vmul.f32 %v1560_v33, %v1624_v16  ;;  %v830_v13 = vmul.f32 %v1565_v34, %v1626_v17  ;;  %v932_v9 = vmul.f32 %v1570_v35, %v1665_v62  ;;  %v1721_v55 = vld [vmem:[#allocation2 + $0x69] sm:$0xff] }
  0x36   : > { %1260 = vst.msk [vmem:[%s1646_s17 + $0x8] sm:$0xff] %vm171_vm0, %v1228_v0  ;;  %v1165_v12 = vadd.f32 %v1133_v58, %v1064_v1  ;;  %v1033_v10 = vmul.f32 %v1581_v39, %v1667_v63  ;;  %v1197_v14 = vadd.f32 %v861_v6, %v558_v56  ;;  %v1134_v19 = vmul.f32 %v1586_v40, %v1671_v5  ;;  %v1727_v0 = vld [vmem:[#allocation2 + $0x6a] sm:$0xff] }
  0x37   : > { %v458_v15 = vadd.f32 %v426_v2, %v357_v7  ;;  %v761_v18 = vadd.f32 %v729_v3, %v628_v8  ;;  %v326_v21 = vmul.f32 %v1523_v22, %v1599_v53  ;;  %v427_v23 = vmul.f32 %v1534_v26, %v1607_v59 }
  0x38   : > { %v1065_v20 = vadd.f32 %v1033_v10, %v932_v9  ;;  %v528_v24 = vmul.f32 %v1539_v27, %v1609_v60  ;;  %v1229_v31 = vadd.f32 %v1197_v14, %v1165_v12  ;;  %v629_v42 = vmul.f32 %v1544_v28, %v1637_v38 }
  0x39   : > { %v559_v36 = vadd.f32 %v527_v4, %v458_v15  ;;  %v862_v37 = vadd.f32 %v830_v13, %v761_v18  ;;  %v358_v53 = vadd.f32 %v1555_v32, %v326_v21  ;;  %v730_v59 = vmul.f32 %v1560_v33, %v1639_v41  ;;  %v1748_v18 = vld [vmem:[#allocation2 + $0x78] sm:$0xff] }
  0x3a   : > { %v1166_v43 = vadd.f32 %v1134_v19, %v1065_v20  ;;  %v831_v60 = vmul.f32 %v1565_v34, %v1650_v46  ;;  %1261 = vst.msk [vmem:[%s1646_s17 + $0x10] sm:$0xff] %vm171_vm0, %v1229_v31  ;;  %v933_v45 = vmul.f32 %v1570_v35, %v1694_v25  ;;  %v1034_v47 = vmul.f32 %v1581_v39, %v1696_v29  ;;  %v1750_v19 = vld [vmem:[#allocation2 + $0x79] sm:$0xff] }
  0x3b   : > { %v1198_v44 = vadd.f32 %v862_v37, %v559_v36  ;;  %v1135_v48 = vmul.f32 %v1586_v40, %v1698_v30  ;;  %v459_v49 = vadd.f32 %v427_v23, %v358_v53  ;;  %v762_v50 = vadd.f32 %v730_v59, %v629_v42  ;;  %v1752_v20 = vld [vmem:[#allocation2 + $0x7a] sm:$0xff] }
  0x3c   : > { %v327_v51 = vmul.f32 %v1523_v22, %v1619_v11  ;;  %v428_v52 = vmul.f32 %v1534_v26, %v1624_v16  ;;  %v1066_v57 = vadd.f32 %v1034_v47, %v933_v45  ;;  %v529_v58 = vmul.f32 %v1539_v27, %v1626_v17  ;;  %v1773_v47 = vld [vmem:[#allocation2 + $0x80] sm:$0xff] }
  0x3d   : > { %v1230_v56 = vadd.f32 %v1198_v44, %v1166_v43  ;;  %v630_v61 = vmul.f32 %v1544_v28, %v1665_v62  ;;  %v560_v1 = vadd.f32 %v528_v24, %v459_v49  ;;  %v863_v2 = vadd.f32 %v831_v60, %v762_v50 }
  0x3e   : > { %v359_v11 = vadd.f32 %v1555_v32, %v327_v51  ;;  %v731_v16 = vmul.f32 %v1560_v33, %v1667_v63  ;;  %v1167_v4 = vadd.f32 %v1135_v48, %v1066_v57  ;;  %v832_v6 = vmul.f32 %v1565_v34, %v1671_v5  ;;  %v1775_v48 = vld [vmem:[#allocation2 + $0x81] sm:$0xff] }
  0x3f   : > { %1262 = vst.msk [vmem:[%s1646_s17 + $0x18] sm:$0xff] %vm171_vm0, %v1230_v56  ;;  %v934_v17 = vmul.f32 %v1570_v35, %v1719_v54  ;;  %v1035_v7 = vmul.f32 %v1581_v39, %v1721_v55  ;;  %v1199_v8 = vadd.f32 %v863_v2, %v560_v1  ;;  %v1136_v13 = vmul.f32 %v1586_v40, %v1727_v0  ;;  %v1781_v56 = vld [vmem:[#allocation2 + $0x82] sm:$0xff] }
  0x40   : > { %v460_v3 = vadd.f32 %v428_v52, %v359_v11  ;;  %v763_v12 = vadd.f32 %v731_v16, %v630_v61  ;;  %v328_v10 = vmul.f32 %v1523_v22, %v1637_v38  ;;  %v429_v14 = vmul.f32 %v1534_v26, %v1639_v41 }
  0x41   : > { %v1067_v9 = vadd.f32 %v1035_v7, %v934_v17  ;;  %v530_v15 = vmul.f32 %v1539_v27, %v1650_v46  ;;  %v1231_v21 = vadd.f32 %v1199_v8, %v1167_v4  ;;  %v631_v31 = vmul.f32 %v1544_v28, %v1694_v25 }
  0x42   : > { %v561_v23 = vadd.f32 %v529_v58, %v460_v3  ;;  %v864_v24 = vadd.f32 %v832_v6, %v763_v12  ;;  %v360_v38 = vadd.f32 %v1555_v32, %v328_v10  ;;  %v732_v41 = vmul.f32 %v1560_v33, %v1696_v29  ;;  %v1802_v12 = vld [vmem:[#allocation2 + $0x90] sm:$0xff] }
  0x43   : > { %v1168_v36 = vadd.f32 %v1136_v13, %v1067_v9  ;;  %v833_v46 = vmul.f32 %v1565_v34, %v1698_v30  ;;  %1263 = vst.msk [vmem:[%s1646_s17 + $0x20] sm:$0xff] %vm171_vm0, %v1231_v21  ;;  %v935_v42 = vmul.f32 %v1570_v35, %v1748_v18  ;;  %v1036_v43 = vmul.f32 %v1581_v39, %v1750_v19  ;;  %v1804_v13 = vld [vmem:[#allocation2 + $0x91] sm:$0xff] }
  0x44   : > { %v1200_v37 = vadd.f32 %v864_v24, %v561_v23  ;;  %v1137_v53 = vmul.f32 %v1586_v40, %v1752_v20  ;;  %v461_v59 = vadd.f32 %v429_v14, %v360_v38  ;;  %v764_v60 = vadd.f32 %v732_v41, %v631_v31  ;;  %v1806_v9 = vld [vmem:[#allocation2 + $0x92] sm:$0xff] }
  0x45   : > { %v329_v44 = vmul.f32 %v1523_v22, %v1665_v62  ;;  %v430_v45 = vmul.f32 %v1534_v26, %v1667_v63  ;;  %v1068_v50 = vadd.f32 %v1036_v43, %v935_v42  ;;  %v531_v51 = vmul.f32 %v1539_v27, %v1671_v5  ;;  %v1827_v43 = vld [vmem:[#allocation2 + $0x98] sm:$0xff] }
  0x46   : > { %v1232_v49 = vadd.f32 %v1200_v37, %v1168_v36  ;;  %v632_v52 = vmul.f32 %v1544_v28, %v1719_v54  ;;  %v562_v57 = vadd.f32 %v530_v15, %v461_v59  ;;  %v865_v58 = vadd.f32 %v833_v46, %v764_v60 }
  0x47   : > { %v361_v62 = vadd.f32 %v1555_v32, %v329_v44  ;;  %v733_v63 = vmul.f32 %v1560_v33, %v1721_v55  ;;  %v1169_v61 = vadd.f32 %v1137_v53, %v1068_v50  ;;  %v834_v1 = vmul.f32 %v1565_v34, %v1727_v0  ;;  %v1829_v53 = vld [vmem:[#allocation2 + $0x99] sm:$0xff] }
  0x48   : > { %1264 = vst.msk [vmem:[%s1646_s17 + $0x28] sm:$0xff] %vm171_vm0, %v1232_v49  ;;  %v936_v5 = vmul.f32 %v1570_v35, %v1773_v47  ;;  %v1037_v2 = vmul.f32 %v1581_v39, %v1775_v48  ;;  %v1201_v11 = vadd.f32 %v865_v58, %v562_v57  ;;  %v1138_v6 = vmul.f32 %v1586_v40, %v1781_v56  ;;  %v1835_v49 = vld [vmem:[#allocation2 + $0x9a] sm:$0xff] }
  0x49   : > { %v462_v16 = vadd.f32 %v430_v45, %v361_v62  ;;  %v765_v4 = vadd.f32 %v733_v63, %v632_v52  ;;  %v330_v7 = vmul.f32 %v1523_v22, %v1694_v25  ;;  %v431_v8 = vmul.f32 %v1534_v26, %v1696_v29 }
  0x4a   : > { %v1069_v17 = vadd.f32 %v1037_v2, %v936_v5  ;;  %v532_v3 = vmul.f32 %v1539_v27, %v1698_v30  ;;  %v1233_v10 = vadd.f32 %v1201_v11, %v1169_v61  ;;  %v633_v21 = vmul.f32 %v1544_v28, %v1748_v18 }
  0x4b   : > { %v563_v14 = vadd.f32 %v531_v51, %v462_v16  ;;  %v866_v15 = vadd.f32 %v834_v1, %v765_v4  ;;  %v362_v25 = vadd.f32 %v1555_v32, %v330_v7  ;;  %v734_v29 = vmul.f32 %v1560_v33, %v1750_v19  ;;  %v1856_v4 = vld [vmem:[#allocation2 + $0xa8] sm:$0xff] }
  0x4c   : > { %v1170_v23 = vadd.f32 %v1138_v6, %v1069_v17  ;;  %v835_v30 = vmul.f32 %v1565_v34, %v1752_v20  ;;  %1265 = vst.msk [vmem:[%s1646_s17 + $0x30] sm:$0xff] %vm171_vm0, %v1233_v10  ;;  %v937_v31 = vmul.f32 %v1570_v35, %v1802_v12  ;;  %v1038_v36 = vmul.f32 %v1581_v39, %v1804_v13  ;;  %v1858_v6 = vld [vmem:[#allocation2 + $0xa9] sm:$0xff] }
  0x4d   : > { %v1202_v24 = vadd.f32 %v866_v15, %v563_v14  ;;  %v1139_v38 = vmul.f32 %v1586_v40, %v1806_v9  ;;  %v463_v41 = vadd.f32 %v431_v8, %v362_v25  ;;  %v766_v46 = vadd.f32 %v734_v29, %v633_v21  ;;  %v1860_v17 = vld [vmem:[#allocation2 + $0xaa] sm:$0xff] }
  0x4e   : > { %v331_v37 = vmul.f32 %v1523_v22, %v1719_v54  ;;  %v432_v42 = vmul.f32 %v1534_v26, %v1721_v55  ;;  %v1070_v60 = vadd.f32 %v1038_v36, %v937_v31  ;;  %v533_v44 = vmul.f32 %v1539_v27, %v1727_v0  ;;  %v1881_v36 = vld [vmem:[#allocation2 + $0xb0] sm:$0xff] }
  0x4f   : > { %v1234_v59 = vadd.f32 %v1202_v24, %v1170_v23  ;;  %v634_v45 = vmul.f32 %v1544_v28, %v1773_v47  ;;  %v564_v50 = vadd.f32 %v532_v3, %v463_v41  ;;  %v867_v51 = vadd.f32 %v835_v30, %v766_v46 }
  0x50   : > { %v363_v54 = vadd.f32 %v1555_v32, %v331_v37  ;;  %v735_v55 = vmul.f32 %v1560_v33, %v1775_v48  ;;  %v1171_v52 = vadd.f32 %v1139_v38, %v1070_v60  ;;  %v836_v57 = vmul.f32 %v1565_v34, %v1781_v56  ;;  %v1883_v38 = vld [vmem:[#allocation2 + $0xb1] sm:$0xff] }
  0x51   : > { %1266 = vst.msk [vmem:[%s1646_s17 + $0x38] sm:$0xff] %vm171_vm0, %v1234_v59  ;;  %v938_v0 = vmul.f32 %v1570_v35, %v1827_v43  ;;  %v1039_v58 = vmul.f32 %v1581_v39, %v1829_v53  ;;  %v1203_v62 = vadd.f32 %v867_v51, %v564_v50  ;;  %v1140_v1 = vmul.f32 %v1586_v40, %v1835_v49  ;;  %v1889_v59 = vld [vmem:[#allocation2 + $0xb2] sm:$0xff] }
  0x52   : > { %v464_v63 = vadd.f32 %v432_v42, %v363_v54  ;;  %v767_v61 = vadd.f32 %v735_v55, %v634_v45  ;;  %v332_v2 = vmul.f32 %v1523_v22, %v1748_v18  ;;  %v433_v11 = vmul.f32 %v1534_v26, %v1750_v19 }
  0x53   : > { %v1071_v5 = vadd.f32 %v1039_v58, %v938_v0  ;;  %v534_v16 = vmul.f32 %v1539_v27, %v1752_v20  ;;  %v1235_v7 = vadd.f32 %v1203_v62, %v1171_v52  ;;  %v635_v10 = vmul.f32 %v1544_v28, %v1802_v12 }
  0x54   : > { %v565_v8 = vadd.f32 %v533_v44, %v464_v63  ;;  %v868_v3 = vadd.f32 %v836_v57, %v767_v61  ;;  %v364_v18 = vadd.f32 %v1555_v32, %v332_v2  ;;  %v736_v19 = vmul.f32 %v1560_v33, %v1804_v13  ;;  %v1910_v61 = vld [vmem:[#allocation2 + $0xc0] sm:$0xff] }
  0x55   : > { %v1172_v14 = vadd.f32 %v1140_v1, %v1071_v5  ;;  %v837_v20 = vmul.f32 %v1565_v34, %v1806_v9  ;;  %1267 = vst.msk [vmem:[%s1646_s17 + $0x40] sm:$0xff] %vm171_vm0, %v1235_v7  ;;  %v939_v21 = vmul.f32 %v1570_v35, %v1856_v4  ;;  %v1040_v23 = vmul.f32 %v1581_v39, %v1858_v6  ;;  %v1912_v1 = vld [vmem:[#allocation2 + $0xc1] sm:$0xff] }
  0x56   : > { %v1204_v15 = vadd.f32 %v868_v3, %v565_v8  ;;  %v1141_v25 = vmul.f32 %v1586_v40, %v1860_v17  ;;  %v465_v29 = vadd.f32 %v433_v11, %v364_v18  ;;  %v768_v30 = vadd.f32 %v736_v19, %v635_v10  ;;  %v1914_v5 = vld [vmem:[#allocation2 + $0xc2] sm:$0xff] }
  0x57   : > { %v333_v24 = vmul.f32 %v1523_v22, %v1773_v47  ;;  %v434_v31 = vmul.f32 %v1534_v26, %v1775_v48  ;;  %v1072_v46 = vadd.f32 %v1040_v23, %v939_v21  ;;  %v535_v37 = vmul.f32 %v1539_v27, %v1781_v56  ;;  %v1935_v23 = vld [vmem:[#allocation2 + $0xc8] sm:$0xff] }
  0x58   : > { %v1236_v41 = vadd.f32 %v1204_v15, %v1172_v14  ;;  %v636_v42 = vmul.f32 %v1544_v28, %v1827_v43  ;;  %v566_v60 = vadd.f32 %v534_v16, %v465_v29  ;;  %v869_v44 = vadd.f32 %v837_v20, %v768_v30 }
  0x59   : > { %v365_v47 = vadd.f32 %v1555_v32, %v333_v24  ;;  %v737_v48 = vmul.f32 %v1560_v33, %v1829_v53  ;;  %v1173_v45 = vadd.f32 %v1141_v25, %v1072_v46  ;;  %v838_v50 = vmul.f32 %v1565_v34, %v1835_v49  ;;  %v1937_v25 = vld [vmem:[#allocation2 + $0xc9] sm:$0xff] }
  0x5a   : > { %1268 = vst.msk [vmem:[%s1646_s17 + $0x48] sm:$0xff] %vm171_vm0, %v1236_v41  ;;  %v940_v56 = vmul.f32 %v1570_v35, %v1881_v36  ;;  %v1041_v51 = vmul.f32 %v1581_v39, %v1883_v38  ;;  %v1205_v54 = vadd.f32 %v869_v44, %v566_v60  ;;  %v1142_v57 = vmul.f32 %v1586_v40, %v1889_v59  ;;  %v1943_v41 = vld [vmem:[#allocation2 + $0xca] sm:$0xff] }
  0x5b   : > { %v466_v55 = vadd.f32 %v434_v31, %v365_v47  ;;  %v769_v52 = vadd.f32 %v737_v48, %v636_v42  ;;  %v334_v58 = vmul.f32 %v1523_v22, %v1802_v12  ;;  %v435_v62 = vmul.f32 %v1534_v26, %v1804_v13 }
  0x5c   : > { %v1073_v0 = vadd.f32 %v1041_v51, %v940_v56  ;;  %v536_v63 = vmul.f32 %v1539_v27, %v1806_v9  ;;  %v1237_v2 = vadd.f32 %v1205_v54, %v1173_v45  ;;  %v637_v7 = vmul.f32 %v1544_v28, %v1856_v4 }
  0x5d   : > { %v567_v11 = vadd.f32 %v535_v37, %v466_v55  ;;  %v870_v16 = vadd.f32 %v838_v50, %v769_v52  ;;  %v366_v12 = vadd.f32 %v1555_v32, %v334_v58  ;;  %v738_v13 = vmul.f32 %v1560_v33, %v1858_v6  ;;  %v1964_v52 = vld [vmem:[#allocation2 + $0xd8] sm:$0xff] }
  0x5e   : > { %v1174_v8 = vadd.f32 %v1142_v57, %v1073_v0  ;;  %v839_v9 = vmul.f32 %v1565_v34, %v1860_v17  ;;  %1269 = vst.msk [vmem:[%s1646_s17 + $0x50] sm:$0xff] %vm171_vm0, %v1237_v2  ;;  %v941_v10 = vmul.f32 %v1570_v35, %v1910_v61  ;;  %v1042_v14 = vmul.f32 %v1581_v39, %v1912_v1  ;;  %v1966_v57 = vld [vmem:[#allocation2 + $0xd9] sm:$0xff] }
  0x5f   : > { %v1206_v3 = vadd.f32 %v870_v16, %v567_v11  ;;  %v1143_v18 = vmul.f32 %v1586_v40, %v1914_v5  ;;  %v467_v19 = vadd.f32 %v435_v62, %v366_v12  ;;  %v770_v20 = vadd.f32 %v738_v13, %v637_v7  ;;  %v1968_v0 = vld [vmem:[#allocation2 + $0xda] sm:$0xff] }
  0x60   : > { %v335_v15 = vmul.f32 %v1523_v22, %v1827_v43  ;;  %v436_v21 = vmul.f32 %v1534_v26, %v1829_v53  ;;  %v1074_v30 = vadd.f32 %v1042_v14, %v941_v10  ;;  %v537_v24 = vmul.f32 %v1539_v27, %v1835_v49  ;;  %v1989_v14 = vld [vmem:[#allocation2 + $0xe0] sm:$0xff] }
  0x61   : > { %v1238_v29 = vadd.f32 %v1206_v3, %v1174_v8  ;;  %v638_v31 = vmul.f32 %v1544_v28, %v1881_v36  ;;  %v568_v46 = vadd.f32 %v536_v63, %v467_v19  ;;  %v871_v37 = vadd.f32 %v839_v9, %v770_v20 }
  0x62   : > { %v367_v43 = vadd.f32 %v1555_v32, %v335_v15  ;;  %v739_v53 = vmul.f32 %v1560_v33, %v1883_v38  ;;  %v1175_v42 = vadd.f32 %v1143_v18, %v1074_v30  ;;  %v840_v60 = vmul.f32 %v1565_v34, %v1889_v59  ;;  %v1991_v18 = vld [vmem:[#allocation2 + $0xe1] sm:$0xff] }
  0x63   : > { %1270 = vst.msk [vmem:[%s1646_s17 + $0x58] sm:$0xff] %vm171_vm0, %v1238_v29  ;;  %v942_v49 = vmul.f32 %v1570_v35, %v1935_v23  ;;  %v1043_v44 = vmul.f32 %v1581_v39, %v1937_v25  ;;  %v1207_v47 = vadd.f32 %v871_v37, %v568_v46  ;;  %v1144_v50 = vmul.f32 %v1586_v40, %v1943_v41  ;;  %v1997_v29 = vld [vmem:[#allocation2 + $0xe2] sm:$0xff] }
  0x64   : > { %v468_v48 = vadd.f32 %v436_v21, %v367_v43  ;;  %v771_v45 = vadd.f32 %v739_v53, %v638_v31  ;;  %v336_v51 = vmul.f32 %v1523_v22, %v1856_v4  ;;  %v437_v54 = vmul.f32 %v1534_v26, %v1858_v6 }
  0x65   : > { %v1075_v56 = vadd.f32 %v1043_v44, %v942_v49  ;;  %v538_v55 = vmul.f32 %v1539_v27, %v1860_v17  ;;  %v1239_v58 = vadd.f32 %v1207_v47, %v1175_v42  ;;  %v639_v2 = vmul.f32 %v1544_v28, %v1910_v61 }
  0x66   : > { %v569_v62 = vadd.f32 %v537_v24, %v468_v48  ;;  %v872_v63 = vadd.f32 %v840_v60, %v771_v45  ;;  %v368_v4 = vadd.f32 %v1555_v32, %v336_v51  ;;  %v740_v6 = vmul.f32 %v1560_v33, %v1912_v1  ;;  %v2018_v45 = vld [vmem:[#allocation2 + $0xf0] sm:$0xff] }
  0x67   : > { %v1176_v11 = vadd.f32 %v1144_v50, %v1075_v56  ;;  %v841_v17 = vmul.f32 %v1565_v34, %v1914_v5  ;;  %1271 = vst.msk [vmem:[%s1646_s17 + $0x60] sm:$0xff] %vm171_vm0, %v1239_v58  ;;  %v943_v7 = vmul.f32 %v1570_v35, %v1964_v52  ;;  %v1044_v8 = vmul.f32 %v1581_v39, %v1966_v57  ;;  %v2020_v50 = vld [vmem:[#allocation2 + $0xf1] sm:$0xff] }
  0x68   : > { %v1208_v16 = vadd.f32 %v872_v63, %v569_v62  ;;  %v1145_v12 = vmul.f32 %v1586_v40, %v1968_v0  ;;  %v469_v13 = vadd.f32 %v437_v54, %v368_v4  ;;  %v772_v9 = vadd.f32 %v740_v6, %v639_v2  ;;  %v2022_v56 = vld [vmem:[#allocation2 + $0xf2] sm:$0xff] }
  0x69   : > { %v337_v3 = vmul.f32 %v1523_v22, %v1881_v36  ;;  %v438_v10 = vmul.f32 %v1534_v26, %v1883_v38  ;;  %v1076_v20 = vadd.f32 %v1044_v8, %v943_v7  ;;  %v539_v15 = vmul.f32 %v1539_v27, %v1889_v59  ;;  %v2043_v8 = vld [vmem:[#allocation2 + $0xf8] sm:$0xff] }
  0x6a   : > { %v1240_v19 = vadd.f32 %v1208_v16, %v1176_v11  ;;  %v640_v21 = vmul.f32 %v1544_v28, %v1935_v23  ;;  %v570_v30 = vadd.f32 %v538_v55, %v469_v13  ;;  %v873_v24 = vadd.f32 %v841_v17, %v772_v9 }
  0x6b   : > { %v369_v36 = vadd.f32 %v1555_v32, %v337_v3  ;;  %v741_v38 = vmul.f32 %v1560_v33, %v1937_v25  ;;  %v1177_v31 = vadd.f32 %v1145_v12, %v1076_v20  ;;  %v842_v46 = vmul.f32 %v1565_v34, %v1943_v41  ;;  %v2045_v12 = vld [vmem:[#allocation2 + $0xf9] sm:$0xff] }
  0x6c   : > { %1272 = vst.msk [vmem:[%s1646_s17 + $0x68] sm:$0xff] %vm171_vm0, %v1240_v19  ;;  %v944_v59 = vmul.f32 %v1570_v35, %v1989_v14  ;;  %v1045_v37 = vmul.f32 %v1581_v39, %v1991_v18  ;;  %v1209_v43 = vadd.f32 %v873_v24, %v570_v30  ;;  %v1146_v60 = vmul.f32 %v1586_v40, %v1997_v29  ;;  %v2051_v19 = vld [vmem:[#allocation2 + $0xfa] sm:$0xff] }
  0x6d   : > { %v470_v53 = vadd.f32 %v438_v10, %v369_v36  ;;  %v773_v42 = vadd.f32 %v741_v38, %v640_v21  ;;  %v338_v44 = vmul.f32 %v1523_v22, %v1910_v61  ;;  %v439_v47 = vmul.f32 %v1534_v26, %v1912_v1 }
  0x6e   : > { %v1077_v49 = vadd.f32 %v1045_v37, %v944_v59  ;;  %v540_v48 = vmul.f32 %v1539_v27, %v1914_v5  ;;  %v1241_v51 = vadd.f32 %v1209_v43, %v1177_v31  ;;  %v641_v58 = vmul.f32 %v1544_v28, %v1964_v52 }
  0x6f   : > { %v571_v54 = vadd.f32 %v539_v15, %v470_v53  ;;  %v874_v55 = vadd.f32 %v842_v46, %v773_v42  ;;  %v370_v61 = vadd.f32 %v1555_v32, %v338_v44  ;;  %v742_v1 = vmul.f32 %v1560_v33, %v1966_v57  ;;  %v2072_v42 = vld [vmem:[#allocation2 + $0x108] sm:$0xff] }
  0x70   : > { %v1178_v62 = vadd.f32 %v1146_v60, %v1077_v49  ;;  %v843_v5 = vmul.f32 %v1565_v34, %v1968_v0  ;;  %1273 = vst.msk [vmem:[%s1646_s17 + $0x70] sm:$0xff] %vm171_vm0, %v1241_v51  ;;  %v945_v2 = vmul.f32 %v1570_v35, %v2018_v45  ;;  %v1046_v11 = vmul.f32 %v1581_v39, %v2020_v50  ;;  %v2074_v60 = vld [vmem:[#allocation2 + $0x109] sm:$0xff] }
  0x71   : > { %v1210_v63 = vadd.f32 %v874_v55, %v571_v54  ;;  %v1147_v4 = vmul.f32 %v1586_v40, %v2022_v56  ;;  %v471_v6 = vadd.f32 %v439_v47, %v370_v61  ;;  %v774_v17 = vadd.f32 %v742_v1, %v641_v58  ;;  %v2076_v49 = vld [vmem:[#allocation2 + $0x10a] sm:$0xff] }
  0x72   : > { %v339_v16 = vmul.f32 %v1523_v22, %v1935_v23  ;;  %v440_v7 = vmul.f32 %v1534_v26, %v1937_v25  ;;  %v1078_v9 = vadd.f32 %v1046_v11, %v945_v2  ;;  %v541_v3 = vmul.f32 %v1539_v27, %v1943_v41  ;;  %v2097_v11 = vld [vmem:[#allocation2 + $0x110] sm:$0xff] }
  0x73   : > { %v1242_v13 = vadd.f32 %v1210_v63, %v1178_v62  ;;  %v642_v10 = vmul.f32 %v1544_v28, %v1989_v14  ;;  %v572_v20 = vadd.f32 %v540_v48, %v471_v6  ;;  %v875_v15 = vadd.f32 %v843_v5, %v774_v17 }
  0x74   : > { %v371_v23 = vadd.f32 %v1555_v32, %v339_v16  ;;  %v743_v25 = vmul.f32 %v1560_v33, %v1991_v18  ;;  %v1179_v21 = vadd.f32 %v1147_v4, %v1078_v9  ;;  %v844_v30 = vmul.f32 %v1565_v34, %v1997_v29  ;;  %v2099_v4 = vld [vmem:[#allocation2 + $0x111] sm:$0xff] }
  0x75   : > { %1274 = vst.msk [vmem:[%s1646_s17 + $0x78] sm:$0xff] %vm171_vm0, %v1242_v13  ;;  %v946_v41 = vmul.f32 %v1570_v35, %v2043_v8  ;;  %v1047_v24 = vmul.f32 %v1581_v39, %v2045_v12  ;;  %v1211_v36 = vadd.f32 %v875_v15, %v572_v20  ;;  %v1148_v46 = vmul.f32 %v1586_v40, %v2051_v19  ;;  %v2105_v13 = vld [vmem:[#allocation2 + $0x112] sm:$0xff] }
  0x76   : > { %v472_v38 = vadd.f32 %v440_v7, %v371_v23  ;;  %v775_v31 = vadd.f32 %v743_v25, %v642_v10  ;;  %v340_v37 = vmul.f32 %v1523_v22, %v1964_v52  ;;  %v441_v43 = vmul.f32 %v1534_v26, %v1966_v57 }
  0x77   : > { %v1079_v59 = vadd.f32 %v1047_v24, %v946_v41  ;;  %v542_v53 = vmul.f32 %v1539_v27, %v1968_v0  ;;  %v1243_v44 = vadd.f32 %v1211_v36, %v1179_v21  ;;  %v643_v51 = vmul.f32 %v1544_v28, %v2018_v45 }
  0x78   : > { %v573_v47 = vadd.f32 %v541_v3, %v472_v38  ;;  %v876_v48 = vadd.f32 %v844_v30, %v775_v31  ;;  %v372_v52 = vadd.f32 %v1555_v32, %v340_v37  ;;  %v744_v57 = vmul.f32 %v1560_v33, %v2020_v50  ;;  %v2126_v31 = vld [vmem:[#allocation2 + $0x120] sm:$0xff] }
  0x79   : > { %v1180_v54 = vadd.f32 %v1148_v46, %v1079_v59  ;;  %v845_v0 = vmul.f32 %v1565_v34, %v2022_v56  ;;  %1275 = vst.msk [vmem:[%s1646_s17 + $0x80] sm:$0xff] %vm171_vm0, %v1243_v44  ;;  %v947_v58 = vmul.f32 %v1570_v35, %v2072_v42  ;;  %v1048_v62 = vmul.f32 %v1581_v39, %v2074_v60  ;;  %v2128_v46 = vld [vmem:[#allocation2 + $0x121] sm:$0xff] }
  0x7a   : > { %v1212_v55 = vadd.f32 %v876_v48, %v573_v47  ;;  %v1149_v61 = vmul.f32 %v1586_v40, %v2076_v49  ;;  %v473_v1 = vadd.f32 %v441_v43, %v372_v52  ;;  %v776_v5 = vadd.f32 %v744_v57, %v643_v51  ;;  %v2130_v59 = vld [vmem:[#allocation2 + $0x122] sm:$0xff] }
  0x7b   : > { %v341_v63 = vmul.f32 %v1523_v22, %v1989_v14  ;;  %v442_v2 = vmul.f32 %v1534_v26, %v1991_v18  ;;  %v1080_v17 = vadd.f32 %v1048_v62, %v947_v58  ;;  %v543_v16 = vmul.f32 %v1539_v27, %v1997_v29  ;;  %v2151_v62 = vld [vmem:[#allocation2 + $0x128] sm:$0xff] }
  0x7c   : > { %v1244_v6 = vadd.f32 %v1212_v55, %v1180_v54  ;;  %v644_v7 = vmul.f32 %v1544_v28, %v2043_v8  ;;  %v574_v9 = vadd.f32 %v542_v53, %v473_v1  ;;  %v877_v3 = vadd.f32 %v845_v0, %v776_v5 }
  0x7d   : > { %v373_v14 = vadd.f32 %v1555_v32, %v341_v63  ;;  %v745_v18 = vmul.f32 %v1560_v33, %v2045_v12  ;;  %v1181_v10 = vadd.f32 %v1149_v61, %v1080_v17  ;;  %v846_v20 = vmul.f32 %v1565_v34, %v2051_v19  ;;  %v2153_v61 = vld [vmem:[#allocation2 + $0x129] sm:$0xff] }
  0x7e   : > { %1276 = vst.msk [vmem:[%s1646_s17 + $0x88] sm:$0xff] %vm171_vm0, %v1244_v6  ;;  %v948_v29 = vmul.f32 %v1570_v35, %v2097_v11  ;;  %v1049_v15 = vmul.f32 %v1581_v39, %v2099_v4  ;;  %v1213_v23 = vadd.f32 %v877_v3, %v574_v9  ;;  %v1150_v30 = vmul.f32 %v1586_v40, %v2105_v13  ;;  %v2159_v6 = vld [vmem:[#allocation2 + $0x12a] sm:$0xff] }
  0x7f   : > { %v474_v25 = vadd.f32 %v442_v2, %v373_v14  ;;  %v777_v21 = vadd.f32 %v745_v18, %v644_v7  ;;  %v342_v24 = vmul.f32 %v1523_v22, %v2018_v45  ;;  %v443_v36 = vmul.f32 %v1534_v26, %v2020_v50  ;;  %v2195_v18 = vld [vmem:[#allocation2 + $0x138] sm:$0xff] }
  0x80   : > { %v1081_v41 = vadd.f32 %v1049_v15, %v948_v29  ;;  %v544_v38 = vmul.f32 %v1539_v27, %v2022_v56  ;;  %v1245_v37 = vadd.f32 %v1213_v23, %v1181_v10  ;;  %v645_v44 = vmul.f32 %v1544_v28, %v2072_v42  ;;  %v2199_v10 = vld [vmem:[#allocation2 + $0x13a] sm:$0xff] }
  0x81   : > { %v575_v43 = vadd.f32 %v543_v16, %v474_v25  ;;  %v878_v53 = vadd.f32 %v846_v20, %v777_v21  ;;  %v374_v45 = vadd.f32 %v1555_v32, %v342_v24  ;;  %v746_v50 = vmul.f32 %v1560_v33, %v2074_v60  ;;  %v2224_v24 = vld [vmem:[%s2460_s1 + $0x5] ss:$0 sm:$0xff] }
  0x82   : > { %v1182_v47 = vadd.f32 %v1150_v30, %v1081_v41  ;;  %v847_v56 = vmul.f32 %v1565_v34, %v2076_v49  ;;  %1277 = vst.msk [vmem:[%s1646_s17 + $0x90] sm:$0xff] %vm171_vm0, %v1245_v37  ;;  %v949_v51 = vmul.f32 %v1570_v35, %v2126_v31  ;;  %v1050_v54 = vmul.f32 %v1581_v39, %v2128_v46  ;;  %v2217_v30 = vld [vmem:[%s2460_s1 + $0x4] ss:$0 sm:$0xff]  ;;  %v2233_v37 = vld [vmem:[%s2460_s1 + $0x6] ss:$0 sm:$0xff] }
  0x83   : > { %v1214_v48 = vadd.f32 %v878_v53, %v575_v43  ;;  %v1151_v52 = vmul.f32 %v1586_v40, %v2130_v59  ;;  %v475_v57 = vadd.f32 %v443_v36, %v374_v45  ;;  %v778_v0 = vadd.f32 %v746_v50, %v645_v44  ;;  %v2240_v53 = vld [vmem:[%s2460_s1 + $0x7] ss:$0 sm:$0xff] }
  0x84   : > { %v343_v55 = vmul.f32 %v1523_v22, %v2043_v8  ;;  %v444_v58 = vmul.f32 %v1534_v26, %v2045_v12  ;;  %v1082_v5 = vadd.f32 %v1050_v54, %v949_v51  ;;  %v545_v63 = vmul.f32 %v1539_v27, %v2051_v19  ;;  %v2255_v54 = vld [vmem:[#allocation2 + $0x140] sm:$0xff] }
  0x85   : > { %v1246_v1 = vadd.f32 %v1214_v48, %v1182_v47  ;;  %v646_v2 = vmul.f32 %v1544_v28, %v2097_v11  ;;  %v576_v17 = vadd.f32 %v544_v38, %v475_v57  ;;  %v879_v16 = vadd.f32 %v847_v56, %v778_v0  ;;  %v2247_v47 = vld [vmem:[%s2460_s1 + $0x8] ss:$0 sm:$0xff] }
  0x86   : > { %v375_v22 = vadd.f32 %v1555_v32, %v343_v55  ;;  %v747_v26 = vmul.f32 %v1560_v33, %v2099_v4  ;;  %v1183_v8 = vadd.f32 %v1151_v52, %v1082_v5  ;;  %v848_v12 = vmul.f32 %v1565_v34, %v2105_v13  ;;  %v2177_v33 = vld [vmem:[%s2460_s1] ss:$0 sm:$0xff]  ;;  %v2257_v52 = vld [vmem:[#allocation2 + $0x141] sm:$0xff] }
  0x87   : > { %1278 = vst.msk [vmem:[%s1646_s17 + $0x98] sm:$0xff] %vm171_vm0, %v1246_v1  ;;  %v950_v27 = vmul.f32 %v1570_v35, %v2151_v62  ;;  %v1051_v28 = vmul.f32 %v1581_v39, %v2153_v61  ;;  %v1215_v19 = vadd.f32 %v879_v16, %v576_v17  ;;  %v1152_v32 = vmul.f32 %v1586_v40, %v2159_v6  ;;  %v2184_v35 = vld [vmem:[%s2460_s1 + $0x1] ss:$0 sm:$0xff]  ;;  %v2191_v40 = vld [vmem:[%s2460_s1 + $0x2] ss:$0 sm:$0xff] }
  0x88   : > { %v476_v7 = vadd.f32 %v444_v58, %v375_v22  ;;  %v779_v9 = vadd.f32 %v747_v26, %v646_v2  ;;  %v344_v34 = vmul.f32 %v2177_v33, %v2072_v42  ;;  %v445_v39 = vmul.f32 %v2184_v35, %v2074_v60  ;;  %v2197_v42 = vld [vmem:[#allocation2 + $0x139] sm:$0xff]  ;;  %v2204_v60 = vld [vmem:[%s2460_s1 + $0x3] ss:$0 sm:$0xff] }
  0x89   : > { %v1083_v3 = vadd.f32 %v1051_v28, %v950_v27  ;;  %v546_v14 = vmul.f32 %v2191_v40, %v2076_v49  ;;  %v1247_v20 = vadd.f32 %v1215_v19, %v1183_v8  ;;  %v647_v23 = vmul.f32 %v2204_v60, %v2126_v31  ;;  %v2211_v49 = vld [vmem:[%s2461_s2] ss:$0 sm:$0xff]  ;;  %v2263_v1 = vld [vmem:[#allocation2 + $0x142] sm:$0xff] }
  0x8a   : > { %v577_v29 = vadd.f32 %v545_v63, %v476_v7  ;;  %v880_v15 = vadd.f32 %v848_v12, %v779_v9  ;;  %v376_v21 = vadd.f32 %v2211_v49, %v344_v34  ;;  %v748_v41 = vmul.f32 %v2217_v30, %v2128_v46  ;;  %v2284_v9 = vld [vmem:[#allocation2 + $0x150] sm:$0xff] }
  0x8b   : > { %v1184_v25 = vadd.f32 %v1152_v32, %v1083_v3  ;;  %v849_v36 = vmul.f32 %v2224_v24, %v2130_v59  ;;  %1279 = vst.msk [vmem:[%s1646_s17 + $0xa0] sm:$0xff] %vm171_vm0, %v1247_v20  ;;  %v951_v43 = vmul.f32 %v2233_v37, %v2195_v18  ;;  %v1052_v44 = vmul.f32 %v2240_v53, %v2197_v42  ;;  %v2286_v32 = vld [vmem:[#allocation2 + $0x151] sm:$0xff] }
  0x8c   : > { %v1216_v38 = vadd.f32 %v880_v15, %v577_v29  ;;  %v1153_v45 = vmul.f32 %v2247_v47, %v2199_v10  ;;  %v477_v50 = vadd.f32 %v445_v39, %v376_v21  ;;  %v780_v56 = vadd.f32 %v748_v41, %v647_v23  ;;  %v2288_v3 = vld [vmem:[#allocation2 + $0x152] sm:$0xff] }
  0x8d   : > { %v345_v48 = vmul.f32 %v2177_v33, %v2097_v11  ;;  %v446_v51 = vmul.f32 %v2184_v35, %v2099_v4  ;;  %v1084_v0 = vadd.f32 %v1052_v44, %v951_v43  ;;  %v547_v55 = vmul.f32 %v2191_v40, %v2105_v13  ;;  %v2309_v44 = vld [vmem:[#allocation2 + $0x158] sm:$0xff] }
  0x8e   : > { %v1248_v57 = vadd.f32 %v1216_v38, %v1184_v25  ;;  %v648_v58 = vmul.f32 %v2204_v60, %v2151_v62  ;;  %v578_v5 = vadd.f32 %v546_v14, %v477_v50  ;;  %v881_v63 = vadd.f32 %v849_v36, %v780_v56 }
  0x8f   : > { %v377_v11 = vadd.f32 %v2211_v49, %v345_v48  ;;  %v749_v4 = vmul.f32 %v2217_v30, %v2153_v61  ;;  %v1185_v2 = vadd.f32 %v1153_v45, %v1084_v0  ;;  %v850_v17 = vmul.f32 %v2224_v24, %v2159_v6  ;;  %v2311_v45 = vld [vmem:[#allocation2 + $0x159] sm:$0xff] }
  0x90   : > { %1280 = vst.msk [vmem:[%s1646_s17 + $0xa8] sm:$0xff] %vm171_vm0, %v1248_v57  ;;  %v952_v13 = vmul.f32 %v2233_v37, %v2255_v54  ;;  %v1053_v16 = vmul.f32 %v2240_v53, %v2257_v52  ;;  %v1217_v22 = vadd.f32 %v881_v63, %v578_v5  ;;  %v1154_v12 = vmul.f32 %v2247_v47, %v2263_v1  ;;  %v2317_v57 = vld [vmem:[#allocation2 + $0x15a] sm:$0xff] }
  0x91   : > { %v478_v26 = vadd.f32 %v446_v51, %v377_v11  ;;  %v781_v8 = vadd.f32 %v749_v4, %v648_v58  ;;  %v346_v28 = vmul.f32 %v2177_v33, %v2126_v31  ;;  %v447_v19 = vmul.f32 %v2184_v35, %v2128_v46 }
  0x92   : > { %v1085_v27 = vadd.f32 %v1053_v16, %v952_v13  ;;  %v548_v7 = vmul.f32 %v2191_v40, %v2130_v59  ;;  %v1249_v34 = vadd.f32 %v1217_v22, %v1185_v2  ;;  %v649_v20 = vmul.f32 %v2204_v60, %v2195_v18 }
  0x93   : > { %v579_v39 = vadd.f32 %v547_v55, %v478_v26  ;;  %v882_v14 = vadd.f32 %v850_v17, %v781_v8  ;;  %v378_v31 = vadd.f32 %v2211_v49, %v346_v28  ;;  %v750_v46 = vmul.f32 %v2217_v30, %v2197_v42  ;;  %v2338_v8 = vld [vmem:[#allocation2 + $0x168] sm:$0xff] }
  0x94   : > { %v1186_v29 = vadd.f32 %v1154_v12, %v1085_v27  ;;  %v851_v59 = vmul.f32 %v2224_v24, %v2199_v10  ;;  %1281 = vst.msk [vmem:[%s1646_s17 + $0xb0] sm:$0xff] %vm171_vm0, %v1249_v34  ;;  %v953_v23 = vmul.f32 %v2233_v37, %v2284_v9  ;;  %v1054_v25 = vmul.f32 %v2240_v53, %v2286_v32  ;;  %v2340_v12 = vld [vmem:[#allocation2 + $0x169] sm:$0xff] }
  0x95   : > { %v1218_v15 = vadd.f32 %v882_v14, %v579_v39  ;;  %v1155_v21 = vmul.f32 %v2247_v47, %v2288_v3  ;;  %v479_v41 = vadd.f32 %v447_v19, %v378_v31  ;;  %v782_v36 = vadd.f32 %v750_v46, %v649_v20  ;;  %v2342_v27 = vld [vmem:[#allocation2 + $0x16a] sm:$0xff] }
  0x96   : > { %v347_v38 = vmul.f32 %v2177_v33, %v2151_v62  ;;  %v448_v43 = vmul.f32 %v2184_v35, %v2153_v61  ;;  %v1086_v56 = vadd.f32 %v1054_v25, %v953_v23  ;;  %v549_v48 = vmul.f32 %v2191_v40, %v2159_v6  ;;  %v2363_v25 = vld [vmem:[#allocation2 + $0x170] sm:$0xff] }
  0x97   : > { %v1250_v50 = vadd.f32 %v1218_v15, %v1186_v29  ;;  %v650_v51 = vmul.f32 %v2204_v60, %v2255_v54  ;;  %v580_v0 = vadd.f32 %v548_v7, %v479_v41  ;;  %v883_v55 = vadd.f32 %v851_v59, %v782_v36 }
  0x98   : > { %v379_v62 = vadd.f32 %v2211_v49, %v347_v38  ;;  %v751_v61 = vmul.f32 %v2217_v30, %v2257_v52  ;;  %v1187_v58 = vadd.f32 %v1155_v21, %v1086_v56  ;;  %v852_v5 = vmul.f32 %v2224_v24, %v2263_v1  ;;  %v2365_v21 = vld [vmem:[#allocation2 + $0x171] sm:$0xff] }
  0x99   : > { %1282 = vst.msk [vmem:[%s1646_s17 + $0xb8] sm:$0xff] %vm171_vm0, %v1250_v50  ;;  %v954_v6 = vmul.f32 %v2233_v37, %v2309_v44  ;;  %v1055_v63 = vmul.f32 %v2240_v53, %v2311_v45  ;;  %v1219_v11 = vadd.f32 %v883_v55, %v580_v0  ;;  %v1156_v17 = vmul.f32 %v2247_v47, %v2317_v57  ;;  %v2371_v50 = vld [vmem:[#allocation2 + $0x172] sm:$0xff] }
  0x9a   : > { %v480_v4 = vadd.f32 %v448_v43, %v379_v62  ;;  %v783_v2 = vadd.f32 %v751_v61, %v650_v51  ;;  %v348_v16 = vmul.f32 %v2177_v33, %v2195_v18  ;;  %v449_v22 = vmul.f32 %v2184_v35, %v2197_v42 }
  0x9b   : > { %v1087_v13 = vadd.f32 %v1055_v63, %v954_v6  ;;  %v550_v26 = vmul.f32 %v2191_v40, %v2199_v10  ;;  %v1251_v28 = vadd.f32 %v1219_v11, %v1187_v58  ;;  %v651_v34 = vmul.f32 %v2204_v60, %v2284_v9 }
  0x9c   : > { %v581_v19 = vadd.f32 %v549_v48, %v480_v4  ;;  %v884_v7 = vadd.f32 %v852_v5, %v783_v2  ;;  %v380_v18 = vadd.f32 %v2211_v49, %v348_v16  ;;  %v752_v42 = vmul.f32 %v2217_v30, %v2286_v32  ;;  %v920_v2 = vld [vmem:[#allocation2 + $0x180] sm:$0xff] }
  0x9d   : > { %v1188_v39 = vadd.f32 %v1156_v17, %v1087_v13  ;;  %v853_v10 = vmul.f32 %v2224_v24, %v2288_v3  ;;  %1283 = vst.msk [vmem:[%s1646_s17 + $0xc0] sm:$0xff] %vm171_vm0, %v1251_v28  ;;  %v955_v20 = vmul.f32 %v2233_v37, %v2338_v8  ;;  %v1056_v29 = vmul.f32 %v2240_v53, %v2340_v12  ;;  %v1021_v17 = vld [vmem:[#allocation2 + $0x181] sm:$0xff] }
  0x9e   : > { %v1220_v14 = vadd.f32 %v884_v7, %v581_v19  ;;  %v1157_v31 = vmul.f32 %v2247_v47, %v2342_v27  ;;  %v481_v46 = vadd.f32 %v449_v22, %v380_v18  ;;  %v784_v59 = vadd.f32 %v752_v42, %v651_v34  ;;  %v1122_v13 = vld [vmem:[#allocation2 + $0x182] sm:$0xff] }
  0x9f   : > { %v349_v15 = vmul.f32 %v2177_v33, %v2255_v54  ;;  %v450_v23 = vmul.f32 %v2184_v35, %v2257_v52  ;;  %v1088_v36 = vadd.f32 %v1056_v29, %v955_v20  ;;  %v551_v38 = vmul.f32 %v2191_v40, %v2263_v1  ;;  %v921_v29 = vld [vmem:[#allocation2 + $0x188] sm:$0xff] }
  0xa0   : > { %v1252_v41 = vadd.f32 %v1220_v14, %v1188_v39  ;;  %v652_v43 = vmul.f32 %v2204_v60, %v2309_v44  ;;  %v582_v56 = vadd.f32 %v550_v26, %v481_v46  ;;  %v885_v48 = vadd.f32 %v853_v10, %v784_v59 }
  0xa1   : > { %v381_v54 = vadd.f32 %v2211_v49, %v349_v15  ;;  %v753_v52 = vmul.f32 %v2217_v30, %v2311_v45  ;;  %v1189_v51 = vadd.f32 %v1157_v31, %v1088_v36  ;;  %v854_v0 = vmul.f32 %v2224_v24, %v2317_v57  ;;  %v1022_v31 = vld [vmem:[#allocation2 + $0x189] sm:$0xff] }
  0xa2   : > { %1284 = vst.msk [vmem:[%s1646_s17 + $0xc8] sm:$0xff] %vm171_vm0, %v1252_v41  ;;  %v956_v1 = vmul.f32 %v2233_v37, %v2363_v25  ;;  %v1057_v55 = vmul.f32 %v2240_v53, %v2365_v21  ;;  %v1221_v62 = vadd.f32 %v885_v48, %v582_v56  ;;  %v1158_v5 = vmul.f32 %v2247_v47, %v2371_v50  ;;  %v1123_v41 = vld [vmem:[#allocation2 + $0x18a] sm:$0xff] }
  0xa3   : > { %v482_v61 = vadd.f32 %v450_v23, %v381_v54  ;;  %v785_v58 = vadd.f32 %v753_v52, %v652_v43  ;;  %v350_v63 = vmul.f32 %v2177_v33, %v2284_v9  ;;  %v451_v11 = vmul.f32 %v2184_v35, %v2286_v32 }
  0xa4   : > { %v1089_v6 = vadd.f32 %v1057_v55, %v956_v1  ;;  %v552_v4 = vmul.f32 %v2191_v40, %v2288_v3  ;;  %v1253_v16 = vadd.f32 %v1221_v62, %v1189_v51  ;;  %v653_v28 = vmul.f32 %v2204_v60, %v2338_v8 }
  0xa5   : > { %v583_v22 = vadd.f32 %v551_v38, %v482_v61  ;;  %v886_v26 = vadd.f32 %v854_v0, %v785_v58  ;;  %v382_v7 = vadd.f32 %v2211_v49, %v350_v63  ;;  %v754_v9 = vmul.f32 %v2217_v30, %v2340_v12  ;;  %v922_v58 = vld [vmem:[#allocation2 + $0x198] sm:$0xff] }
  0xa6   : > { %v1190_v19 = vadd.f32 %v1158_v5, %v1089_v6  ;;  %v855_v32 = vmul.f32 %v2224_v24, %v2342_v27  ;;  %1285 = vst.msk [vmem:[%s1646_s17 + $0xd0] sm:$0xff] %vm171_vm0, %v1253_v16  ;;  %v957_v34 = vmul.f32 %v2233_v37, %v920_v2  ;;  %v1058_v39 = vmul.f32 %v2240_v53, %v1021_v17  ;;  %v1023_v5 = vld [vmem:[#allocation2 + $0x199] sm:$0xff] }
  0xa7   : > { %v1222_v3 = vadd.f32 %v886_v26, %v583_v22  ;;  %v1159_v18 = vmul.f32 %v2247_v47, %v1122_v13  ;;  %v483_v42 = vadd.f32 %v451_v11, %v382_v7  ;;  %v786_v10 = vadd.f32 %v754_v9, %v653_v28  ;;  %v1124_v6 = vld [vmem:[#allocation2 + $0x19a] sm:$0xff] }
  0xa8   : > { %v351_v14 = vmul.f32 %v2177_v33, %v2309_v44  ;;  %v452_v20 = vmul.f32 %v2184_v35, %v2311_v45  ;;  %v1090_v59 = vadd.f32 %v1058_v39, %v957_v34  ;;  %v553_v15 = vmul.f32 %v2191_v40, %v2317_v57 }
  0xa9   : > { %v1254_v46 = vadd.f32 %v1222_v3, %v1190_v19  ;;  %v654_v23 = vmul.f32 %v2204_v60, %v2363_v25  ;;  %v584_v36 = vadd.f32 %v552_v4, %v483_v42  ;;  %v887_v38 = vadd.f32 %v855_v32, %v786_v10  ;;  %v923_v3 = vld [vmem:[#allocation2 + $0x1a0] sm:$0xff] }
  0xaa   : > { %v383_v43 = vadd.f32 %v2211_v49, %v351_v14  ;;  %v755_v44 = vmul.f32 %v2217_v30, %v2365_v21  ;;  %v1191_v45 = vadd.f32 %v1159_v18, %v1090_v59  ;;  %v856_v56 = vmul.f32 %v2224_v24, %v2371_v50  ;;  %v1125_v10 = vld [vmem:[#allocation2 + $0x1a2] sm:$0xff] }
  0xab   : > { %1286 = vst.msk [vmem:[%s1646_s17 + $0xd8] sm:$0xff] %vm171_vm0, %v1254_v46  ;;  %v958_v48 = vmul.f32 %v2233_v37, %v921_v29  ;;  %v1059_v57 = vmul.f32 %v2240_v53, %v1022_v31  ;;  %v1223_v54 = vadd.f32 %v887_v38, %v584_v36  ;;  %v1160_v0 = vmul.f32 %v2247_v47, %v1123_v41 }
  0xac   : > { %v484_v52 = vadd.f32 %v452_v20, %v383_v43  ;;  %v787_v51 = vadd.f32 %v755_v44, %v654_v23  ;;  %v352_v55 = vmul.f32 %v2177_v33, %v2338_v8  ;;  %v453_v62 = vmul.f32 %v2184_v35, %v2340_v12 }
  0xad   : > { %v1091_v1 = vadd.f32 %v1059_v57, %v958_v48  ;;  %v554_v61 = vmul.f32 %v2191_v40, %v2342_v27  ;;  %v1255_v63 = vadd.f32 %v1223_v54, %v1191_v45  ;;  %v655_v16 = vmul.f32 %v2204_v60, %v920_v2 }
  0xae   : > { %v585_v11 = vadd.f32 %v553_v15, %v484_v52  ;;  %v888_v4 = vadd.f32 %v856_v56, %v787_v51  ;;  %v384_v26 = vadd.f32 %v2211_v49, %v352_v55  ;;  %v756_v28 = vmul.f32 %v2217_v30, %v1021_v17 }
  0xaf   : > { %v1192_v22 = vadd.f32 %v1160_v0, %v1091_v1  ;;  %v857_v8 = vmul.f32 %v2224_v24, %v1122_v13  ;;  %1287 = vst.msk [vmem:[%s1646_s17 + $0xe0] sm:$0xff] %vm171_vm0, %v1255_v63  ;;  %v959_v27 = vmul.f32 %v2233_v37, %v922_v58  ;;  %v1060_v19 = vmul.f32 %v2240_v53, %v1023_v5  ;;  %v1024_v13 = vld [vmem:[#allocation2 + $0x1a1] sm:$0xff] }
  0xb0   : > { %v1224_v12 = vadd.f32 %v888_v4, %v585_v11  ;;  %v1161_v7 = vmul.f32 %v2247_v47, %v1124_v6  ;;  %v485_v9 = vadd.f32 %v453_v62, %v384_v26  ;;  %v788_v32 = vadd.f32 %v756_v28, %v655_v16 }
  0xb1   : > { %v353_v2 = vmul.f32 %v2177_v33, %v2363_v25  ;;  %v454_v17 = vmul.f32 %v2184_v35, %v2365_v21  ;;  %v1092_v39 = vadd.f32 %v1060_v19, %v959_v27  ;;  %v555_v18 = vmul.f32 %v2191_v40, %v2371_v50 }
  0xb2   : > { %v1256_v34 = vadd.f32 %v1224_v12, %v1192_v22  ;;  %v656_v42 = vmul.f32 %v2204_v60, %v921_v29  ;;  %v586_v14 = vadd.f32 %v554_v61, %v485_v9  ;;  %v889_v20 = vadd.f32 %v857_v8, %v788_v32 }
  0xb3   : > { %v385_v46 = vadd.f32 %v2211_v49, %v353_v2  ;;  %v757_v33 = vmul.f32 %v2217_v30, %v1022_v31  ;;  %v1193_v35 = vadd.f32 %v1161_v7, %v1092_v39  ;;  %v858_v25 = vmul.f32 %v2224_v24, %v1123_v41 }
  0xb4   : > { %1288 = vst.msk [vmem:[%s1646_s17 + $0xe8] sm:$0xff] %vm171_vm0, %v1256_v34  ;;  %v960_v21 = vmul.f32 %v2233_v37, %v923_v3  ;;  %v1061_v40 = vmul.f32 %v2240_v53, %v1024_v13  ;;  %v1225_v50 = vadd.f32 %v889_v20, %v586_v14  ;;  %v1162_v59 = vmul.f32 %v2247_v47, %v1125_v10 }
  0xb5   : > { %v486_v60 = vadd.f32 %v454_v17, %v385_v46  ;;  %v789_v29 = vadd.f32 %v757_v33, %v656_v42 }
  0xb6   : > { %v1093_v15 = vadd.f32 %v1061_v40, %v960_v21  ;;  %v1257_v23 = vadd.f32 %v1225_v50, %v1193_v35 }
  0xb7   : > { %v587_v49 = vadd.f32 %v555_v18, %v486_v60  ;;  %v890_v36 = vadd.f32 %v858_v25, %v789_v29 }
  0xb8   : > { %1289 = vst.msk [vmem:[%s1646_s17 + $0xf0] sm:$0xff] %vm171_vm0, %v1257_v23  ;;  %v1194_v30 = vadd.f32 %v1162_v59, %v1093_v15 }
  0xb9   : > { %v1226_v31 = vadd.f32 %v890_v36, %v587_v49 }
  0xbb   : > { %v1258_v38 = vadd.f32 %v1226_v31, %v1194_v30 }
  0xbd   : > { %1290 = vst.msk [vmem:[%s1646_s17 + $0xf8] sm:$0xff] %vm171_vm0, %v1258_v38 }
  0xbe PF: > { %s13_s12 = sadd.s32 1, %s1394_s12  }
  0xbf   : > { %p10_p4 = scmp.ge.s32.totalorder %s13_s12, 4  }
  0xc1   :  { %12 = sbr.rel (!%p10_p4) target bundleno = 1 (0x1), region = 65 }

</bundles_post_ra>
